<compile_context>
chip_gen: v6e
topology: v6e:2x2x1
jax: 0.10.0
libtpu: 0.0.40
codegen_flags: <defaults>
</compile_context>

<pallas_src>
import functools

import jax
import jax.numpy as jnp
from jax.experimental import pallas as pl
from jax.experimental.pallas import tpu as pltpu


# ----------------------------------------------------------------------------
# Pass 1: attention statistics -> beta  (tiled over N, accumulate in scratch)
#   a_ref   : SMEM (1, 1)        PReLU slope
#   x_ref   : [M*L, TILE_N]      embeds tile, row k = lid*M + i
#   w1,b1   : [H, 1]             Linear(1, H) weight / bias (column layout)
#   w2,b2   : [H, H], [H, 1]     Linear(H, H) weight (out x in) / bias
#   att     : [H, 1]             attention vector (num_heads == 1)
#   beta    : [1, M*L]           softmax attention weights (output)
#   acc     : [H, M*L]           VMEM scratch, sum over edges of tanh(fc(x))
# ----------------------------------------------------------------------------
def _attn_scores_kernel(a_ref, x_ref, w1_ref, b1_ref, w2_ref, b2_ref, att_ref,
                        beta_ref, acc_ref, *, n_total, tile_n):
    j = pl.program_id(0)

    @pl.when(j == 0)
    def _():
        acc_ref[...] = jnp.zeros_like(acc_ref)

    ml = x_ref.shape[0]
    f32 = jnp.float32

    w1 = w1_ref[...]                      # [H, 1]
    b1 = b1_ref[...]                      # [H, 1]
    w2 = w2_ref[...]                      # [H, H]
    b2 = b2_ref[...]                      # [H, 1]
    slope = a_ref[0, 0]

    # Lane-validity mask: only needed when N is not a multiple of TILE_N.
    if n_total % tile_n != 0:
        lane = jax.lax.broadcasted_iota(jnp.int32, (1, tile_n), 1)
        valid = ((lane + j * tile_n) < n_total).astype(f32)   # [1, TILE_N]
    else:
        valid = None

    for g in range(ml):                                   # M*L is tiny (4)
        xg = x_ref[g:g + 1, :]                             # [1, TILE_N]
        # fc[0]: Linear(1, H)  (outer-product broadcast, lane-dense [H, T])
        h1 = w1 * xg + b1                                  # [H, TILE_N]
        # fc[1]: PReLU (single slope)
        h1 = jnp.where(h1 > 0, h1, slope * h1)
        # fc[2]: Linear(H, H)
        h2 = jnp.dot(w2, h1, preferred_element_type=f32) + b2
        th = jnp.tanh(h2)                                  # [H, TILE_N]
        if valid is not None:
            th = th * valid
        # group-mean numerator: lane (XLU) reduction, accumulated over tiles
        acc_ref[:, g:g + 1] += jnp.sum(th, axis=-1, keepdims=True)

    @pl.when(j == pl.num_programs(0) - 1)
    def _():
        sp = acc_ref[...] * (1.0 / n_total)                # [H, M*L]  mean
        scores = jnp.sum(sp * att_ref[...], axis=0, keepdims=True)   # [1, M*L]
        mx = jnp.max(scores, axis=-1, keepdims=True)
        e = jnp.exp(scores - mx)
        beta_ref[...] = e / jnp.sum(e, axis=-1, keepdims=True)


# ----------------------------------------------------------------------------
# Pass 2: z = sum_i beta * embeds  ->  combine_ps  ->  alpha fusion  (per tile)
#   beta : SMEM [1, M*L],  aw : SMEM [L, 2]  (softmax(alpha), host-hoisted)
#   x    : [M*L, TILE_N],  s1/gnn : [L, TILE_N]
#   outs / s2 / g : [L, TILE_N]
# ----------------------------------------------------------------------------
def _combine_kernel(beta_ref, aw_ref, x_ref, s1_ref, gnn_ref,
                    outs_ref, s2_ref, g_ref, *, psi, m):
    n_layers = s1_ref.shape[0]
    for l in range(n_layers):
        z = beta_ref[0, l * m] * x_ref[l * m:l * m + 1, :]
        for i in range(1, m):
            k = l * m + i
            z = z + beta_ref[0, k] * x_ref[k:k + 1, :]
        s2 = jax.nn.sigmoid((1.0 - psi) * s1_ref[l:l + 1, :] + psi * z)
        g = jax.nn.sigmoid(gnn_ref[l:l + 1, :])
        s2_ref[l:l + 1, :] = s2
        g_ref[l:l + 1, :] = g
        outs_ref[l:l + 1, :] = aw_ref[l, 0] * s2 + aw_ref[l, 1] * g


_SMEM = pl.BlockSpec(memory_space=pltpu.MemorySpace.SMEM)


@functools.partial(jax.jit, static_argnames=("psi",))
def mm_forward(out_structs1, tacl, gacl, gnn_scores, alpha, params, *, psi):
    """Forward pass of Mm with struct=True, gnn=True, inter_layer=[MAAN, OAN]."""
    embeds = [tacl, gacl]                 # p2att input: the two inter-layer branches
    M = len(embeds)
    L = len(embeds[0])
    N = embeds[0][0].shape[0]
    ML = M * L
    H = params["w1"].shape[0]

    # Row k = lid*M + i, matching the PyTorch double-loop ordering.
    rows = []
    for lid in range(L):
        for i in range(M):
            rows.append(embeds[i][lid].reshape(N))
    x_mat = jnp.stack(rows, axis=0).astype(jnp.float32)                # [M*L, N]
    s1 = jnp.stack([o.reshape(N) for o in out_structs1]).astype(jnp.float32)
    gnn = jnp.stack([o.reshape(N) for o in gnn_scores]).astype(jnp.float32)

    # Lane-dense tiling over the edge axis.
    TILE_N = 512
    n_pad = ((N + TILE_N - 1) // TILE_N) * TILE_N
    pad = n_pad - N
    if pad:
        x_p = jnp.pad(x_mat, ((0, 0), (0, pad)))
        s1_p = jnp.pad(s1, ((0, 0), (0, pad)))
        gnn_p = jnp.pad(gnn, ((0, 0), (0, pad)))
    else:
        x_p, s1_p, gnn_p = x_mat, s1, gnn
    num_tiles = n_pad // TILE_N

    # ---- pass 1: attention (p2att) -> beta ----------------------------------
    beta = pl.pallas_call(
        functools.partial(_attn_scores_kernel, n_total=N, tile_n=TILE_N),
        out_shape=jax.ShapeDtypeStruct((1, ML), jnp.float32),
        grid_spec=pltpu.PrefetchScalarGridSpec(
            num_scalar_prefetch=0,
            grid=(num_tiles,),
            in_specs=[
                _SMEM,                                                  # PReLU slope
                pl.BlockSpec((ML, TILE_N), lambda j: (0, j)),           # x tile
                pl.BlockSpec((H, 1), lambda j: (0, 0)),                 # w1
                pl.BlockSpec((H, 1), lambda j: (0, 0)),                 # b1
                pl.BlockSpec((H, H), lambda j: (0, 0)),                 # w2
                pl.BlockSpec((H, 1), lambda j: (0, 0)),                 # b2
                pl.BlockSpec((H, 1), lambda j: (0, 0)),                 # att
            ],
            out_specs=pl.BlockSpec((1, ML), lambda j: (0, 0)),
            scratch_shapes=[pltpu.VMEM((H, ML), jnp.float32)],
        ),
        compiler_params=pltpu.CompilerParams(
            dimension_semantics=("arbitrary",)),
    )(params["a_prelu"], x_p, params["w1"], params["b1"], params["w2"],
      params["b2"], params["att"])

    # softmax(alpha) hoisted out of the kernel (tiny, per review).
    aw = jax.nn.softmax(alpha.astype(jnp.float32), axis=-1)             # [L, 2]

    # ---- pass 2: z / combine_ps / alpha mix (parallel over tiles) -----------
    out_sds = jax.ShapeDtypeStruct((L, n_pad), jnp.float32)
    outs, s2, g = pl.pallas_call(
        functools.partial(_combine_kernel, psi=float(psi), m=M),
        out_shape=(out_sds, out_sds, out_sds),
        grid_spec=pltpu.PrefetchScalarGridSpec(
            num_scalar_prefetch=0,
            grid=(num_tiles,),
            in_specs=[
                _SMEM,                                                  # beta
                _SMEM,                                                  # aw
                pl.BlockSpec((ML, TILE_N), lambda j: (0, j)),           # x tile
                pl.BlockSpec((L, TILE_N), lambda j: (0, j)),            # s1 tile
                pl.BlockSpec((L, TILE_N), lambda j: (0, j)),            # gnn tile
            ],
            out_specs=(pl.BlockSpec((L, TILE_N), lambda j: (0, j)),
                       pl.BlockSpec((L, TILE_N), lambda j: (0, j)),
                       pl.BlockSpec((L, TILE_N), lambda j: (0, j))),
        ),
        compiler_params=pltpu.CompilerParams(
            dimension_semantics=("parallel",)),
    )(beta, aw, x_p, s1_p, gnn_p)

    return outs[:, :N], s2[:, :N], g[:, :N]


def init_params(key, hidden_dim):
    """Deterministic init matching Attention.reset_parameters (xavier-normal,
    gain=sqrt(2)) and PReLU default slope 0.25.  Column / out-x-in layouts."""
    H = hidden_dim
    k1, k2, k3, k4, k5 = jax.random.split(key, 5)
    gain = jnp.sqrt(2.0)
    std1 = gain * jnp.sqrt(2.0 / (1 + H))        # Linear(1, H) weight
    std2 = gain * jnp.sqrt(2.0 / (H + H))        # Linear(H, H) weight
    std3 = gain * jnp.sqrt(2.0 / (H + H))        # att (1, 1, H)
    return {
        "w1": (jax.random.normal(k1, (H, 1)) * std1).astype(jnp.float32),
        "b1": (jax.random.uniform(k4, (H, 1), minval=-1.0, maxval=1.0)
               ).astype(jnp.float32),
        "a_prelu": jnp.full((1, 1), 0.25, dtype=jnp.float32),
        "w2": (jax.random.normal(k2, (H, H)) * std2).astype(jnp.float32),
        "b2": (jax.random.uniform(k5, (H, 1), minval=-1.0 / jnp.sqrt(H),
                                  maxval=1.0 / jnp.sqrt(H))).astype(jnp.float32),
        "att": (jax.random.normal(k3, (H, 1)) * std3).astype(jnp.float32),
    }


def _reference_forward(out_structs1, tacl, gacl, gnn_scores, alpha, params, psi):
    """Plain-JAX reference of the same math (correctness check only)."""
    embeds = [tacl, gacl]
    M, L = len(embeds), len(embeds[0])
    w1, b1 = params["w1"], params["b1"]          # [H, 1]
    w2, b2 = params["w2"], params["b2"]          # [H, H], [H, 1]
    att = params["att"][:, 0]                    # [H]
    slope = params["a_prelu"][0, 0]

    scores = []
    for lid in range(L):
        for i in range(M):
            xr = embeds[i][lid].reshape(1, -1).astype(jnp.float32)     # [1, N]
            h = w1 * xr + b1
            h = jnp.where(h > 0, h, slope * h)
            h = w2 @ h + b2
            sp = jnp.tanh(h).mean(axis=1)                              # [H]
            scores.append(jnp.sum(att * sp))
    beta = jax.nn.softmax(jnp.stack(scores))

    aw = jax.nn.softmax(alpha.astype(jnp.float32), axis=-1)
    outs, s2s, gs = [], [], []
    for lid in range(L):
        z = 0.0
        for i in range(M):
            z = z + embeds[i][lid].reshape(-1) * beta[lid * M + i]
        s2 = jax.nn.sigmoid((1.0 - psi) * out_structs1[lid].reshape(-1) + psi * z)
        gg = jax.nn.sigmoid(gnn_scores[lid].reshape(-1))
        outs.append(aw[lid, 0] * s2 + aw[lid, 1] * gg)
        s2s.append(s2)
        gs.append(gg)
    return jnp.stack(outs), jnp.stack(s2s), jnp.stack(gs)


if __name__ == "__main__":
    L = 2          # n_layers
    M = 2          # number of inter-layer modes (MAAN, OAN)
    N = 8          # edges / scores per layer
    H = 32         # phi_dim (attention hidden dim)
    psi = 0.3

    key = jax.random.PRNGKey(0)
    kp, *ks = jax.random.split(key, 1 + 4 * L)
    params = init_params(kp, H)

    # TODO(synk): outputs of MLStruct / MAA / Glob / (MGAT + predictor) are
    # synthesized deterministically — those modules are not defined in the
    # reference source.
    out_structs1 = [jax.random.normal(ks[l], (N, 1), dtype=jnp.float32) for l in range(L)]
    tacl = [jax.random.normal(ks[L + l], (N, 1), dtype=jnp.float32) for l in range(L)]
    gacl = [jax.random.normal(ks[2 * L + l], (N, 1), dtype=jnp.float32) for l in range(L)]
    gnn_scores = [jax.random.normal(ks[3 * L + l], (N, 1), dtype=jnp.float32) for l in range(L)]

    # self.alpha initialized to 0.0 (reset_parameters -> constant_(0.0))
    alpha = jnp.zeros((L, 2), dtype=jnp.float32)

    outs, out_structs2, out_gnns = mm_forward(
        out_structs1, tacl, gacl, gnn_scores, alpha, params, psi=psi)
    jax.block_until_ready((outs, out_structs2, out_gnns))

    r_outs, r_s2, r_g = _reference_forward(
        out_structs1, tacl, gacl, gnn_scores, alpha, params, psi)
    ok = (jnp.allclose(outs, r_outs, atol=1e-3, rtol=1e-3)
          and jnp.allclose(out_structs2, r_s2, atol=1e-3, rtol=1e-3)
          and jnp.allclose(out_gnns, r_g, atol=1e-3, rtol=1e-3))
    if not bool(ok):
        raise SystemExit("Pallas output mismatch vs JAX reference")
    print("KERNEL_OK")
</pallas_src>

<mosaic_0001>
module attributes {stable_mosaic.version = 11 : i64} {
  func.func @_attn_scores_kernel(%arg0: i32, %arg1: memref<1x1xf32, #tpu.memory_space<smem>>, %arg2: memref<4x512xf32, #tpu.memory_space<vmem>>, %arg3: memref<32x1xf32, #tpu.memory_space<vmem>>, %arg4: memref<32x1xf32, #tpu.memory_space<vmem>>, %arg5: memref<32x32xf32, #tpu.memory_space<vmem>>, %arg6: memref<32x1xf32, #tpu.memory_space<vmem>>, %arg7: memref<32x1xf32, #tpu.memory_space<vmem>>, %arg8: memref<1x4xf32, #tpu.memory_space<vmem>>, %arg9: memref<32x4xf32, #tpu.memory_space<vmem>>) attributes {dimension_semantics = [#tpu.dimension_semantics<arbitrary>], iteration_bounds = array<i64: 1>, scalar_prefetch = 0 : i64, scratch_operands = 1 : i64, tpu.core_type = #tpu.core_type<tc>, window_params = [{transform_indices = @transform_0, window_bounds = array<i64: 1, 1>}, {transform_indices = @transform_1, window_bounds = array<i64: 4, 512>}, {pipeline_mode = #tpu.pipeline_mode<synchronous>, transform_indices = @transform_2, window_bounds = array<i64: 32, 1>}, {pipeline_mode = #tpu.pipeline_mode<synchronous>, transform_indices = @transform_3, window_bounds = array<i64: 32, 1>}, {pipeline_mode = #tpu.pipeline_mode<synchronous>, transform_indices = @transform_4, window_bounds = array<i64: 32, 32>}, {pipeline_mode = #tpu.pipeline_mode<synchronous>, transform_indices = @transform_5, window_bounds = array<i64: 32, 1>}, {pipeline_mode = #tpu.pipeline_mode<synchronous>, transform_indices = @transform_6, window_bounds = array<i64: 32, 1>}, {pipeline_mode = #tpu.pipeline_mode<synchronous>, transform_indices = @transform_7, window_bounds = array<i64: 1, 4>}]} {
    %c0_i32 = arith.constant 0 : i32
    %0 = arith.cmpi eq, %arg0, %c0_i32 : i32
    %1 = arith.extui %0 : i1 to i32
    %c0_i32_0 = arith.constant 0 : i32
    %2 = arith.cmpi ne, %1, %c0_i32_0 : i32
    scf.if %2 {
      %cst_44 = arith.constant 0.000000e+00 : f32
      %107 = vector.broadcast %cst_44 : f32 to vector<32x4xf32>
      %c0_45 = arith.constant 0 : index
      %c0_46 = arith.constant 0 : index
      %108 = vector.load %arg9[%c0_45, %c0_46] : memref<32x4xf32, #tpu.memory_space<vmem>>, vector<32x4xf32>
      tpu.vector_store %arg9[%c0_45, %c0_46], %107 {strides = array<i32>} : memref<32x4xf32, #tpu.memory_space<vmem>>, vector<32x4xf32>,
    } else {
    }
    %c0 = arith.constant 0 : index
    %c0_1 = arith.constant 0 : index
    %3 = vector.load %arg3[%c0, %c0_1] : memref<32x1xf32, #tpu.memory_space<vmem>>, vector<32x1xf32>
    %c0_2 = arith.constant 0 : index
    %c0_3 = arith.constant 0 : index
    %4 = vector.load %arg4[%c0_2, %c0_3] : memref<32x1xf32, #tpu.memory_space<vmem>>, vector<32x1xf32>
    %c0_4 = arith.constant 0 : index
    %c0_5 = arith.constant 0 : index
    %5 = vector.load %arg5[%c0_4, %c0_5] : memref<32x32xf32, #tpu.memory_space<vmem>>, vector<32x32xf32>
    %c0_6 = arith.constant 0 : index
    %c0_7 = arith.constant 0 : index
    %6 = vector.load %arg6[%c0_6, %c0_7] : memref<32x1xf32, #tpu.memory_space<vmem>>, vector<32x1xf32>
    %c0_8 = arith.constant 0 : index
    %c0_9 = arith.constant 0 : index
    %7 = memref.load %arg1[%c0_8, %c0_9] : memref<1x1xf32, #tpu.memory_space<smem>>
    %8 = tpu.iota {dimensions = array<i32: 1>} : vector<1x512xi32>
    %c512_i32 = arith.constant 512 : i32
    %9 = arith.muli %arg0, %c512_i32 : i32
    %10 = vector.broadcast %9 : i32 to vector<1x512xi32>
    %11 = arith.addi %8, %10 : vector<1x512xi32>
    %c8_i32 = arith.constant 8 : i32
    %12 = vector.broadcast %c8_i32 : i32 to vector<1x512xi32>
    %13 = arith.cmpi slt, %11, %12 : vector<1x512xi32>
    %14 = arith.extui %13 : vector<1x512xi1> to vector<1x512xi32>
    %15 = arith.sitofp %14 : vector<1x512xi32> to vector<1x512xf32>
    %c0_10 = arith.constant 0 : index
    %c0_11 = arith.constant 0 : index
    %16 = vector.load %arg2[%c0_10, %c0_11] : memref<4x512xf32, #tpu.memory_space<vmem>>, vector<1x512xf32>
    %17 = vector.broadcast %3 : vector<32x1xf32> to vector<32x512xf32>
    %18 = vector.broadcast %16 : vector<1x512xf32> to vector<32x512xf32>
    %19 = arith.mulf %17, %18 : vector<32x512xf32>
    %20 = vector.broadcast %4 : vector<32x1xf32> to vector<32x512xf32>
    %21 = arith.addf %19, %20 : vector<32x512xf32>
    %cst = arith.constant 0.000000e+00 : f32
    %22 = vector.broadcast %cst : f32 to vector<32x512xf32>
    %23 = arith.cmpf ogt, %21, %22 : vector<32x512xf32>
    %24 = vector.broadcast %7 : f32 to vector<32x512xf32>
    %25 = arith.mulf %24, %21 : vector<32x512xf32>
    %26 = arith.select %23, %21, %25 : vector<32x512xi1>, vector<32x512xf32>
    %cst_12 = arith.constant dense<0.000000e+00> : vector<32x512xf32>
    %27 = tpu.matmul %5, %26, %cst_12 {dimension_numbers = #tpu.dot_dimension_numbers<[1], [0], [0], [1], [0, 0, 1, 1], [], []>} : vector<32x32xf32>, vector<32x512xf32>, vector<32x512xf32> -> vector<32x512xf32>
    %28 = vector.broadcast %6 : vector<32x1xf32> to vector<32x512xf32>
    %29 = arith.addf %27, %28 : vector<32x512xf32>
    %30 = math.tanh %29 : vector<32x512xf32>
    %31 = vector.broadcast %15 : vector<1x512xf32> to vector<32x512xf32>
    %32 = arith.mulf %30, %31 : vector<32x512xf32>
    %c0_13 = arith.constant 0 : index
    %c0_14 = arith.constant 0 : index
    %33 = vector.load %arg9[%c0_13, %c0_14] : memref<32x4xf32, #tpu.memory_space<vmem>>, vector<32x1xf32>
    %cst_15 = arith.constant dense<0.000000e+00> : vector<32xf32>
    %34 = vector.multi_reduction <add>, %32, %cst_15 [1] : vector<32x512xf32> to vector<32xf32>
    %35 = vector.shape_cast %34 : vector<32xf32> to vector<32x1xf32>
    %36 = arith.addf %33, %35 : vector<32x1xf32>
    %c0_16 = arith.constant 0 : index
    %c0_17 = arith.constant 0 : index
    %37 = vector.load %arg9[%c0_16, %c0_17] : memref<32x4xf32, #tpu.memory_space<vmem>>, vector<32x1xf32>
    tpu.vector_store %arg9[%c0_16, %c0_17], %36 {strides = array<i32>} : memref<32x4xf32, #tpu.memory_space<vmem>>, vector<32x1xf32>,
    %c1 = arith.constant 1 : index
    %c0_18 = arith.constant 0 : index
    %38 = vector.load %arg2[%c1, %c0_18] : memref<4x512xf32, #tpu.memory_space<vmem>>, vector<1x512xf32>
    %39 = vector.broadcast %3 : vector<32x1xf32> to vector<32x512xf32>
    %40 = vector.broadcast %38 : vector<1x512xf32> to vector<32x512xf32>
    %41 = arith.mulf %39, %40 : vector<32x512xf32>
    %42 = vector.broadcast %4 : vector<32x1xf32> to vector<32x512xf32>
    %43 = arith.addf %41, %42 : vector<32x512xf32>
    %cst_19 = arith.constant 0.000000e+00 : f32
    %44 = vector.broadcast %cst_19 : f32 to vector<32x512xf32>
    %45 = arith.cmpf ogt, %43, %44 : vector<32x512xf32>
    %46 = vector.broadcast %7 : f32 to vector<32x512xf32>
    %47 = arith.mulf %46, %43 : vector<32x512xf32>
    %48 = arith.select %45, %43, %47 : vector<32x512xi1>, vector<32x512xf32>
    %cst_20 = arith.constant dense<0.000000e+00> : vector<32x512xf32>
    %49 = tpu.matmul %5, %48, %cst_20 {dimension_numbers = #tpu.dot_dimension_numbers<[1], [0], [0], [1], [0, 0, 1, 1], [], []>} : vector<32x32xf32>, vector<32x512xf32>, vector<32x512xf32> -> vector<32x512xf32>
    %50 = vector.broadcast %6 : vector<32x1xf32> to vector<32x512xf32>
    %51 = arith.addf %49, %50 : vector<32x512xf32>
    %52 = math.tanh %51 : vector<32x512xf32>
    %53 = vector.broadcast %15 : vector<1x512xf32> to vector<32x512xf32>
    %54 = arith.mulf %52, %53 : vector<32x512xf32>
    %c0_21 = arith.constant 0 : index
    %c1_22 = arith.constant 1 : index
    %55 = vector.load %arg9[%c0_21, %c1_22] : memref<32x4xf32, #tpu.memory_space<vmem>>, vector<32x1xf32>
    %cst_23 = arith.constant dense<0.000000e+00> : vector<32xf32>
    %56 = vector.multi_reduction <add>, %54, %cst_23 [1] : vector<32x512xf32> to vector<32xf32>
    %57 = vector.shape_cast %56 : vector<32xf32> to vector<32x1xf32>
    %58 = arith.addf %55, %57 : vector<32x1xf32>
    %c0_24 = arith.constant 0 : index
    %c1_25 = arith.constant 1 : index
    %59 = vector.load %arg9[%c0_24, %c1_25] : memref<32x4xf32, #tpu.memory_space<vmem>>, vector<32x1xf32>
    tpu.vector_store %arg9[%c0_24, %c1_25], %58 {strides = array<i32>} : memref<32x4xf32, #tpu.memory_space<vmem>>, vector<32x1xf32>,
    %c2 = arith.constant 2 : index
    %c0_26 = arith.constant 0 : index
    %60 = vector.load %arg2[%c2, %c0_26] : memref<4x512xf32, #tpu.memory_space<vmem>>, vector<1x512xf32>
    %61 = vector.broadcast %3 : vector<32x1xf32> to vector<32x512xf32>
    %62 = vector.broadcast %60 : vector<1x512xf32> to vector<32x512xf32>
    %63 = arith.mulf %61, %62 : vector<32x512xf32>
    %64 = vector.broadcast %4 : vector<32x1xf32> to vector<32x512xf32>
    %65 = arith.addf %63, %64 : vector<32x512xf32>
    %cst_27 = arith.constant 0.000000e+00 : f32
    %66 = vector.broadcast %cst_27 : f32 to vector<32x512xf32>
    %67 = arith.cmpf ogt, %65, %66 : vector<32x512xf32>
    %68 = vector.broadcast %7 : f32 to vector<32x512xf32>
    %69 = arith.mulf %68, %65 : vector<32x512xf32>
    %70 = arith.select %67, %65, %69 : vector<32x512xi1>, vector<32x512xf32>
    %cst_28 = arith.constant dense<0.000000e+00> : vector<32x512xf32>
    %71 = tpu.matmul %5, %70, %cst_28 {dimension_numbers = #tpu.dot_dimension_numbers<[1], [0], [0], [1], [0, 0, 1, 1], [], []>} : vector<32x32xf32>, vector<32x512xf32>, vector<32x512xf32> -> vector<32x512xf32>
    %72 = vector.broadcast %6 : vector<32x1xf32> to vector<32x512xf32>
    %73 = arith.addf %71, %72 : vector<32x512xf32>
    %74 = math.tanh %73 : vector<32x512xf32>
    %75 = vector.broadcast %15 : vector<1x512xf32> to vector<32x512xf32>
    %76 = arith.mulf %74, %75 : vector<32x512xf32>
    %c0_29 = arith.constant 0 : index
    %c2_30 = arith.constant 2 : index
    %77 = vector.load %arg9[%c0_29, %c2_30] : memref<32x4xf32, #tpu.memory_space<vmem>>, vector<32x1xf32>
    %cst_31 = arith.constant dense<0.000000e+00> : vector<32xf32>
    %78 = vector.multi_reduction <add>, %76, %cst_31 [1] : vector<32x512xf32> to vector<32xf32>
    %79 = vector.shape_cast %78 : vector<32xf32> to vector<32x1xf32>
    %80 = arith.addf %77, %79 : vector<32x1xf32>
    %c0_32 = arith.constant 0 : index
    %c2_33 = arith.constant 2 : index
    %81 = vector.load %arg9[%c0_32, %c2_33] : memref<32x4xf32, #tpu.memory_space<vmem>>, vector<32x1xf32>
    tpu.vector_store %arg9[%c0_32, %c2_33], %80 {strides = array<i32>} : memref<32x4xf32, #tpu.memory_space<vmem>>, vector<32x1xf32>,
    %c3 = arith.constant 3 : index
    %c0_34 = arith.constant 0 : index
    %82 = vector.load %arg2[%c3, %c0_34] : memref<4x512xf32, #tpu.memory_space<vmem>>, vector<1x512xf32>
    %83 = vector.broadcast %3 : vector<32x1xf32> to vector<32x512xf32>
    %84 = vector.broadcast %82 : vector<1x512xf32> to vector<32x512xf32>
    %85 = arith.mulf %83, %84 : vector<32x512xf32>
    %86 = vector.broadcast %4 : vector<32x1xf32> to vector<32x512xf32>
    %87 = arith.addf %85, %86 : vector<32x512xf32>
    %cst_35 = arith.constant 0.000000e+00 : f32
    %88 = vector.broadcast %cst_35 : f32 to vector<32x512xf32>
    %89 = arith.cmpf ogt, %87, %88 : vector<32x512xf32>
    %90 = vector.broadcast %7 : f32 to vector<32x512xf32>
    %91 = arith.mulf %90, %87 : vector<32x512xf32>
    %92 = arith.select %89, %87, %91 : vector<32x512xi1>, vector<32x512xf32>
    %cst_36 = arith.constant dense<0.000000e+00> : vector<32x512xf32>
    %93 = tpu.matmul %5, %92, %cst_36 {dimension_numbers = #tpu.dot_dimension_numbers<[1], [0], [0], [1], [0, 0, 1, 1], [], []>} : vector<32x32xf32>, vector<32x512xf32>, vector<32x512xf32> -> vector<32x512xf32>
    %94 = vector.broadcast %6 : vector<32x1xf32> to vector<32x512xf32>
    %95 = arith.addf %93, %94 : vector<32x512xf32>
    %96 = math.tanh %95 : vector<32x512xf32>
    %97 = vector.broadcast %15 : vector<1x512xf32> to vector<32x512xf32>
    %98 = arith.mulf %96, %97 : vector<32x512xf32>
    %c0_37 = arith.constant 0 : index
    %c3_38 = arith.constant 3 : index
    %99 = vector.load %arg9[%c0_37, %c3_38] : memref<32x4xf32, #tpu.memory_space<vmem>>, vector<32x1xf32>
    %cst_39 = arith.constant dense<0.000000e+00> : vector<32xf32>
    %100 = vector.multi_reduction <add>, %98, %cst_39 [1] : vector<32x512xf32> to vector<32xf32>
    %101 = vector.shape_cast %100 : vector<32xf32> to vector<32x1xf32>
    %102 = arith.addf %99, %101 : vector<32x1xf32>
    %c0_40 = arith.constant 0 : index
    %c3_41 = arith.constant 3 : index
    %103 = vector.load %arg9[%c0_40, %c3_41] : memref<32x4xf32, #tpu.memory_space<vmem>>, vector<32x1xf32>
    tpu.vector_store %arg9[%c0_40, %c3_41], %102 {strides = array<i32>} : memref<32x4xf32, #tpu.memory_space<vmem>>, vector<32x1xf32>,
    %c0_i32_42 = arith.constant 0 : i32
    %104 = arith.cmpi eq, %arg0, %c0_i32_42 : i32
    %105 = arith.extui %104 : i1 to i32
    %c0_i32_43 = arith.constant 0 : i32
    %106 = arith.cmpi ne, %105, %c0_i32_43 : i32
    scf.if %106 {
      %c0_44 = arith.constant 0 : index
      %c0_45 = arith.constant 0 : index
      %107 = vector.load %arg9[%c0_44, %c0_45] : memref<32x4xf32, #tpu.memory_space<vmem>>, vector<32x4xf32>
      %cst_46 = arith.constant 1.250000e-01 : f32
      %108 = vector.broadcast %cst_46 : f32 to vector<32x4xf32>
      %109 = arith.mulf %107, %108 : vector<32x4xf32>
      %c0_47 = arith.constant 0 : index
      %c0_48 = arith.constant 0 : index
      %110 = vector.load %arg7[%c0_47, %c0_48] : memref<32x1xf32, #tpu.memory_space<vmem>>, vector<32x1xf32>
      %111 = vector.broadcast %110 : vector<32x1xf32> to vector<32x4xf32>
      %112 = arith.mulf %109, %111 : vector<32x4xf32>
      %cst_49 = arith.constant dense<0.000000e+00> : vector<4xf32>
      %113 = vector.multi_reduction <add>, %112, %cst_49 [0] : vector<32x4xf32> to vector<4xf32>
      %114 = vector.shape_cast %113 : vector<4xf32> to vector<1x4xf32>
      %cst_50 = arith.constant dense<0xFF800000> : vector<1xf32>
      %115 = vector.multi_reduction <maximumf>, %114, %cst_50 [1] : vector<1x4xf32> to vector<1xf32>
      %116 = vector.shape_cast %115 : vector<1xf32> to vector<1x1xf32>
      %117 = vector.broadcast %116 : vector<1x1xf32> to vector<1x4xf32>
      %118 = arith.subf %114, %117 : vector<1x4xf32>
      %119 = math.exp %118 : vector<1x4xf32>
      %cst_51 = arith.constant dense<0.000000e+00> : vector<1xf32>
      %120 = vector.multi_reduction <add>, %119, %cst_51 [1] : vector<1x4xf32> to vector<1xf32>
      %121 = vector.shape_cast %120 : vector<1xf32> to vector<1x1xf32>
      %122 = vector.broadcast %121 : vector<1x1xf32> to vector<1x4xf32>
      %123 = arith.divf %119, %122 : vector<1x4xf32>
      %c0_52 = arith.constant 0 : index
      %c0_53 = arith.constant 0 : index
      %124 = vector.load %arg8[%c0_52, %c0_53] : memref<1x4xf32, #tpu.memory_space<vmem>>, vector<1x4xf32>
      tpu.vector_store %arg8[%c0_52, %c0_53], %123 {strides = array<i32>} : memref<1x4xf32, #tpu.memory_space<vmem>>, vector<1x4xf32>,
    } else {
    }
    return
  }
  func.func @transform_0(%arg0: i32) -> (i32, i32) {
    %c0_i32 = arith.constant 0 : i32
    %c0_i32_0 = arith.constant 0 : i32
    %c0_i32_1 = arith.constant 0 : i32
    return %c0_i32, %c0_i32_0 : i32, i32
  }
  func.func @transform_1(%arg0: i32) -> (i32, i32) {
    %c0_i32 = arith.constant 0 : i32
    %c0_i32_0 = arith.constant 0 : i32
    return %c0_i32, %arg0 : i32, i32
  }
  func.func @transform_2(%arg0: i32) -> (i32, i32) {
    %c0_i32 = arith.constant 0 : i32
    %c0_i32_0 = arith.constant 0 : i32
    %c0_i32_1 = arith.constant 0 : i32
    return %c0_i32, %c0_i32_0 : i32, i32
  }
  func.func @transform_3(%arg0: i32) -> (i32, i32) {
    %c0_i32 = arith.constant 0 : i32
    %c0_i32_0 = arith.constant 0 : i32
    %c0_i32_1 = arith.constant 0 : i32
    return %c0_i32, %c0_i32_0 : i32, i32
  }
  func.func @transform_4(%arg0: i32) -> (i32, i32) {
    %c0_i32 = arith.constant 0 : i32
    %c0_i32_0 = arith.constant 0 : i32
    %c0_i32_1 = arith.constant 0 : i32
    return %c0_i32, %c0_i32_0 : i32, i32
  }
  func.func @transform_5(%arg0: i32) -> (i32, i32) {
    %c0_i32 = arith.constant 0 : i32
    %c0_i32_0 = arith.constant 0 : i32
    %c0_i32_1 = arith.constant 0 : i32
    return %c0_i32, %c0_i32_0 : i32, i32
  }
  func.func @transform_6(%arg0: i32) -> (i32, i32) {
    %c0_i32 = arith.constant 0 : i32
    %c0_i32_0 = arith.constant 0 : i32
    %c0_i32_1 = arith.constant 0 : i32
    return %c0_i32, %c0_i32_0 : i32, i32
  }
  func.func @transform_7(%arg0: i32) -> (i32, i32) {
    %c0_i32 = arith.constant 0 : i32
    %c0_i32_0 = arith.constant 0 : i32
    %c0_i32_1 = arith.constant 0 : i32
    return %c0_i32, %c0_i32_0 : i32, i32
  }
}

module attributes {stable_mosaic.version = 11 : i64} {
  func.func @_combine_kernel(%arg0: i32, %arg1: memref<1x4xf32, #tpu.memory_space<smem>>, %arg2: memref<2x2xf32, #tpu.memory_space<smem>>, %arg3: memref<4x512xf32, #tpu.memory_space<vmem>>, %arg4: memref<2x512xf32, #tpu.memory_space<vmem>>, %arg5: memref<2x512xf32, #tpu.memory_space<vmem>>, %arg6: memref<2x512xf32, #tpu.memory_space<vmem>>, %arg7: memref<2x512xf32, #tpu.memory_space<vmem>>, %arg8: memref<2x512xf32, #tpu.memory_space<vmem>>) attributes {dimension_semantics = [#tpu.dimension_semantics<parallel>], iteration_bounds = array<i64: 1>, scalar_prefetch = 0 : i64, scratch_operands = 0 : i64, tpu.core_type = #tpu.core_type<tc>, window_params = [{transform_indices = @transform_0, window_bounds = array<i64: 1, 4>}, {transform_indices = @transform_1, window_bounds = array<i64: 2, 2>}, {transform_indices = @transform_2, window_bounds = array<i64: 4, 512>}, {transform_indices = @transform_3, window_bounds = array<i64: 2, 512>}, {transform_indices = @transform_4, window_bounds = array<i64: 2, 512>}, {transform_indices = @transform_5, window_bounds = array<i64: 2, 512>}, {transform_indices = @transform_6, window_bounds = array<i64: 2, 512>}, {transform_indices = @transform_7, window_bounds = array<i64: 2, 512>}]} {
    %c0 = arith.constant 0 : index
    %c0_0 = arith.constant 0 : index
    %0 = memref.load %arg1[%c0, %c0_0] : memref<1x4xf32, #tpu.memory_space<smem>>
    %c0_1 = arith.constant 0 : index
    %c0_2 = arith.constant 0 : index
    %1 = vector.load %arg3[%c0_1, %c0_2] : memref<4x512xf32, #tpu.memory_space<vmem>>, vector<1x512xf32>
    %2 = vector.broadcast %0 : f32 to vector<1x512xf32>
    %3 = arith.mulf %2, %1 : vector<1x512xf32>
    %c0_3 = arith.constant 0 : index
    %c1 = arith.constant 1 : index
    %4 = memref.load %arg1[%c0_3, %c1] : memref<1x4xf32, #tpu.memory_space<smem>>
    %c1_4 = arith.constant 1 : index
    %c0_5 = arith.constant 0 : index
    %5 = vector.load %arg3[%c1_4, %c0_5] : memref<4x512xf32, #tpu.memory_space<vmem>>, vector<1x512xf32>
    %6 = vector.broadcast %4 : f32 to vector<1x512xf32>
    %7 = arith.mulf %6, %5 : vector<1x512xf32>
    %8 = arith.addf %3, %7 : vector<1x512xf32>
    %c0_6 = arith.constant 0 : index
    %c0_7 = arith.constant 0 : index
    %9 = vector.load %arg4[%c0_6, %c0_7] : memref<2x512xf32, #tpu.memory_space<vmem>>, vector<1x512xf32>
    %cst = arith.constant 0.699999988 : f32
    %10 = vector.broadcast %cst : f32 to vector<1x512xf32>
    %11 = arith.mulf %10, %9 : vector<1x512xf32>
    %cst_8 = arith.constant 3.000000e-01 : f32
    %12 = vector.broadcast %cst_8 : f32 to vector<1x512xf32>
    %13 = arith.mulf %12, %8 : vector<1x512xf32>
    %14 = arith.addf %11, %13 : vector<1x512xf32>
    %15 = arith.negf %14 : vector<1x512xf32>
    %16 = math.exp %15 : vector<1x512xf32>
    %cst_9 = arith.constant 1.000000e+00 : f32
    %17 = vector.broadcast %cst_9 : f32 to vector<1x512xf32>
    %18 = arith.addf %17, %16 : vector<1x512xf32>
    %19 = arith.divf %17, %18 : vector<1x512xf32>
    %c0_10 = arith.constant 0 : index
    %c0_11 = arith.constant 0 : index
    %20 = vector.load %arg5[%c0_10, %c0_11] : memref<2x512xf32, #tpu.memory_space<vmem>>, vector<1x512xf32>
    %21 = arith.negf %20 : vector<1x512xf32>
    %22 = math.exp %21 : vector<1x512xf32>
    %cst_12 = arith.constant 1.000000e+00 : f32
    %23 = vector.broadcast %cst_12 : f32 to vector<1x512xf32>
    %24 = arith.addf %23, %22 : vector<1x512xf32>
    %25 = arith.divf %23, %24 : vector<1x512xf32>
    %c0_13 = arith.constant 0 : index
    %c0_14 = arith.constant 0 : index
    %26 = vector.load %arg7[%c0_13, %c0_14] : memref<2x512xf32, #tpu.memory_space<vmem>>, vector<1x512xf32>
    tpu.vector_store %arg7[%c0_13, %c0_14], %19 {strides = array<i32>} : memref<2x512xf32, #tpu.memory_space<vmem>>, vector<1x512xf32>,
    %c0_15 = arith.constant 0 : index
    %c0_16 = arith.constant 0 : index
    %27 = vector.load %arg8[%c0_15, %c0_16] : memref<2x512xf32, #tpu.memory_space<vmem>>, vector<1x512xf32>
    tpu.vector_store %arg8[%c0_15, %c0_16], %25 {strides = array<i32>} : memref<2x512xf32, #tpu.memory_space<vmem>>, vector<1x512xf32>,
    %c0_17 = arith.constant 0 : index
    %c0_18 = arith.constant 0 : index
    %28 = memref.load %arg2[%c0_17, %c0_18] : memref<2x2xf32, #tpu.memory_space<smem>>
    %29 = vector.broadcast %28 : f32 to vector<1x512xf32>
    %30 = arith.mulf %29, %19 : vector<1x512xf32>
    %c0_19 = arith.constant 0 : index
    %c1_20 = arith.constant 1 : index
    %31 = memref.load %arg2[%c0_19, %c1_20] : memref<2x2xf32, #tpu.memory_space<smem>>
    %32 = vector.broadcast %31 : f32 to vector<1x512xf32>
    %33 = arith.mulf %32, %25 : vector<1x512xf32>
    %34 = arith.addf %30, %33 : vector<1x512xf32>
    %c0_21 = arith.constant 0 : index
    %c0_22 = arith.constant 0 : index
    %35 = vector.load %arg6[%c0_21, %c0_22] : memref<2x512xf32, #tpu.memory_space<vmem>>, vector<1x512xf32>
    tpu.vector_store %arg6[%c0_21, %c0_22], %34 {strides = array<i32>} : memref<2x512xf32, #tpu.memory_space<vmem>>, vector<1x512xf32>,
    %c0_23 = arith.constant 0 : index
    %c2 = arith.constant 2 : index
    %36 = memref.load %arg1[%c0_23, %c2] : memref<1x4xf32, #tpu.memory_space<smem>>
    %c2_24 = arith.constant 2 : index
    %c0_25 = arith.constant 0 : index
    %37 = vector.load %arg3[%c2_24, %c0_25] : memref<4x512xf32, #tpu.memory_space<vmem>>, vector<1x512xf32>
    %38 = vector.broadcast %36 : f32 to vector<1x512xf32>
    %39 = arith.mulf %38, %37 : vector<1x512xf32>
    %c0_26 = arith.constant 0 : index
    %c3 = arith.constant 3 : index
    %40 = memref.load %arg1[%c0_26, %c3] : memref<1x4xf32, #tpu.memory_space<smem>>
    %c3_27 = arith.constant 3 : index
    %c0_28 = arith.constant 0 : index
    %41 = vector.load %arg3[%c3_27, %c0_28] : memref<4x512xf32, #tpu.memory_space<vmem>>, vector<1x512xf32>
    %42 = vector.broadcast %40 : f32 to vector<1x512xf32>
    %43 = arith.mulf %42, %41 : vector<1x512xf32>
    %44 = arith.addf %39, %43 : vector<1x512xf32>
    %c1_29 = arith.constant 1 : index
    %c0_30 = arith.constant 0 : index
    %45 = vector.load %arg4[%c1_29, %c0_30] : memref<2x512xf32, #tpu.memory_space<vmem>>, vector<1x512xf32>
    %cst_31 = arith.constant 0.699999988 : f32
    %46 = vector.broadcast %cst_31 : f32 to vector<1x512xf32>
    %47 = arith.mulf %46, %45 : vector<1x512xf32>
    %cst_32 = arith.constant 3.000000e-01 : f32
    %48 = vector.broadcast %cst_32 : f32 to vector<1x512xf32>
    %49 = arith.mulf %48, %44 : vector<1x512xf32>
    %50 = arith.addf %47, %49 : vector<1x512xf32>
    %51 = arith.negf %50 : vector<1x512xf32>
    %52 = math.exp %51 : vector<1x512xf32>
    %cst_33 = arith.constant 1.000000e+00 : f32
    %53 = vector.broadcast %cst_33 : f32 to vector<1x512xf32>
    %54 = arith.addf %53, %52 : vector<1x512xf32>
    %55 = arith.divf %53, %54 : vector<1x512xf32>
    %c1_34 = arith.constant 1 : index
    %c0_35 = arith.constant 0 : index
    %56 = vector.load %arg5[%c1_34, %c0_35] : memref<2x512xf32, #tpu.memory_space<vmem>>, vector<1x512xf32>
    %57 = arith.negf %56 : vector<1x512xf32>
    %58 = math.exp %57 : vector<1x512xf32>
    %cst_36 = arith.constant 1.000000e+00 : f32
    %59 = vector.broadcast %cst_36 : f32 to vector<1x512xf32>
    %60 = arith.addf %59, %58 : vector<1x512xf32>
    %61 = arith.divf %59, %60 : vector<1x512xf32>
    %c1_37 = arith.constant 1 : index
    %c0_38 = arith.constant 0 : index
    %62 = vector.load %arg7[%c1_37, %c0_38] : memref<2x512xf32, #tpu.memory_space<vmem>>, vector<1x512xf32>
    tpu.vector_store %arg7[%c1_37, %c0_38], %55 {strides = array<i32>} : memref<2x512xf32, #tpu.memory_space<vmem>>, vector<1x512xf32>,
    %c1_39 = arith.constant 1 : index
    %c0_40 = arith.constant 0 : index
    %63 = vector.load %arg8[%c1_39, %c0_40] : memref<2x512xf32, #tpu.memory_space<vmem>>, vector<1x512xf32>
    tpu.vector_store %arg8[%c1_39, %c0_40], %61 {strides = array<i32>} : memref<2x512xf32, #tpu.memory_space<vmem>>, vector<1x512xf32>,
    %c1_41 = arith.constant 1 : index
    %c0_42 = arith.constant 0 : index
    %64 = memref.load %arg2[%c1_41, %c0_42] : memref<2x2xf32, #tpu.memory_space<smem>>
    %65 = vector.broadcast %64 : f32 to vector<1x512xf32>
    %66 = arith.mulf %65, %55 : vector<1x512xf32>
    %c1_43 = arith.constant 1 : index
    %c1_44 = arith.constant 1 : index
    %67 = memref.load %arg2[%c1_43, %c1_44] : memref<2x2xf32, #tpu.memory_space<smem>>
    %68 = vector.broadcast %67 : f32 to vector<1x512xf32>
    %69 = arith.mulf %68, %61 : vector<1x512xf32>
    %70 = arith.addf %66, %69 : vector<1x512xf32>
    %c1_45 = arith.constant 1 : index
    %c0_46 = arith.constant 0 : index
    %71 = vector.load %arg6[%c1_45, %c0_46] : memref<2x512xf32, #tpu.memory_space<vmem>>, vector<1x512xf32>
    tpu.vector_store %arg6[%c1_45, %c0_46], %70 {strides = array<i32>} : memref<2x512xf32, #tpu.memory_space<vmem>>, vector<1x512xf32>,
    return
  }
  func.func @transform_0(%arg0: i32) -> (i32, i32) {
    %c0_i32 = arith.constant 0 : i32
    %c0_i32_0 = arith.constant 0 : i32
    %c0_i32_1 = arith.constant 0 : i32
    return %c0_i32, %c0_i32_0 : i32, i32
  }
  func.func @transform_1(%arg0: i32) -> (i32, i32) {
    %c0_i32 = arith.constant 0 : i32
    %c0_i32_0 = arith.constant 0 : i32
    %c0_i32_1 = arith.constant 0 : i32
    return %c0_i32, %c0_i32_0 : i32, i32
  }
  func.func @transform_2(%arg0: i32) -> (i32, i32) {
    %c0_i32 = arith.constant 0 : i32
    %c0_i32_0 = arith.constant 0 : i32
    return %c0_i32, %arg0 : i32, i32
  }
  func.func @transform_3(%arg0: i32) -> (i32, i32) {
    %c0_i32 = arith.constant 0 : i32
    %c0_i32_0 = arith.constant 0 : i32
    return %c0_i32, %arg0 : i32, i32
  }
  func.func @transform_4(%arg0: i32) -> (i32, i32) {
    %c0_i32 = arith.constant 0 : i32
    %c0_i32_0 = arith.constant 0 : i32
    return %c0_i32, %arg0 : i32, i32
  }
  func.func @transform_5(%arg0: i32) -> (i32, i32) {
    %c0_i32 = arith.constant 0 : i32
    %c0_i32_0 = arith.constant 0 : i32
    return %c0_i32, %arg0 : i32, i32
  }
  func.func @transform_6(%arg0: i32) -> (i32, i32) {
    %c0_i32 = arith.constant 0 : i32
    %c0_i32_0 = arith.constant 0 : i32
    return %c0_i32, %arg0 : i32, i32
  }
  func.func @transform_7(%arg0: i32) -> (i32, i32) {
    %c0_i32 = arith.constant 0 : i32
    %c0_i32_0 = arith.constant 0 : i32
    return %c0_i32, %arg0 : i32, i32
  }
}

</mosaic_0001>

<bundles_post_ra>
// kernel: mm_forward.3
= control target key start
LH: loop header
LB: loop body
LE: loop exit
PB: predicated region body
PF: predicated region fallthrough
CT: control target
= control target key end

     0   :  { %13 = vsyncpa [#allocation3], 0  ;;  %s316_s0 = inlined_call_operand.vmem [shape: f32[1,4], index: 0, kind: input, shape index: {}]   ;;  %s317_s1 = inlined_call_operand.vmem [shape: f32[2,2], index: 1, kind: input, shape index: {}]   ;;  %s318_s2 = inlined_call_operand.vmem [shape: f32[4,512], index: 2, kind: input, shape index: {}]   ;;  %s319_s3 = inlined_call_operand.vmem [shape: f32[2,512], index: 3, kind: input, shape index: {}]   ;;  %s320_s4 = inlined_call_operand.vmem [shape: f32[2,512], index: 4, kind: input, shape index: {}]   ;;  %s321_s5 = inlined_call_operand.vmem [shape: f32[2,512], index: 5, kind: output, shape index: {0}]   ;;  %s322_s6 = inlined_call_operand.vmem [shape: f32[2,512], index: 6, kind: output, shape index: {1}]   ;;  %s323_s7 = inlined_call_operand.vmem [shape: f32[2,512], index: 7, kind: output, shape index: {2}]  }
   0x1   :  { %s21_s26 = sshll.u32 %s316_s0, 4  ;;  %s22_s26 = int_to_ptr.vmem [resolvable:$true] %s21_s26 }
   0x2   :  { %14 = vsyncpa [#allocation5], 0  ;;  %s31_s29 = sshll.u32 %s317_s1, 4  ;;  %s182_s30 = scalar_lea.vmem %s22_s26, 16  ;;  %s32_s29 = int_to_ptr.vmem [resolvable:$true] %s31_s29 }
   0x3   :  { %p183_p0 = scmp.ne.s32.totalorder %s22_s26, %s182_s30  ;;  %p187_p1 = scmp.lt.s32.totalorder %s22_s26, %s22_s26 }
   0x4   :  { %p188_p2 = scmp.lt.s32.totalorder %s182_s30, %s182_s30 }
   0x6   :  { %p189_p3 = por %p188_p2, %p187_p1 }
   0x8   :  { %p190_p4 = pnand %p189_p3, %p183_p0 }
   0xa   :  { %193 = shalt.err (!%p190_p4)
}
   0xb   :  { %s210_s8 = smov [#allocation2]   ;;  %s194_s9 = scalar_lea.vmem %s32_s29, 32 }
   0xc   :  { %24 = dma.vmem_to_smem %s22_s26, 16, %s210_s8, [#allocation3]  }
   0xd   :  { %p195_p5 = scmp.ne.s32.totalorder %s32_s29, %s194_s9  ;;  %p199_p6 = scmp.lt.s32.totalorder %s32_s29, %s32_s29 }
   0xe   :  { %p200_p7 = scmp.lt.s32.totalorder %s194_s9, %s194_s9 }
  0x10   :  { %p201_p8 = por %p200_p7, %p199_p6 }
  0x12   :  { %p202_p9 = pnand %p201_p8, %p195_p5 }
  0x14   :  { %205 = shalt.err (!%p202_p9)
}
  0x15   :  { %s211_s0 = smov [#allocation4]  }
  0x16   :  { %34 = dma.vmem_to_smem %s32_s29, 32, %s211_s0, [#allocation5]  }
  0x17   :  { %206 = dma.done.wait [#allocation3], 16  }
  0x18   :  { %207 = vsyncadd [#allocation3], 4294967280 }
  0x19   :  { %208 = dma.done.wait [#allocation5], 32  }
  0x1a   :  { %209 = vsyncadd [#allocation5], 4294967264 }
  0x1b   :  { %47 = sfence }
  0x1c   :  { %s48_s1 = sld [smem:[#allocation2]]  ;;  %v68_v0 = vld [vmem:[%s320_s4] ss:$2 sm:$0xf]  ;;  %v75_v32 = vlaneseq }
  0x1d   :  { %s146_s10 = sld [smem:[#allocation2 + $0x1]]  ;;  %v49_v1 = vld [vmem:[%s318_s2] ss:$4 sm:$0xf]  ;;  %v149_v2 = vmul.f32 -1.442695, %v68_v0 }
  0x1e   :  { %v147_v3 = vld [vmem:[%s318_s2 + $0x1] ss:$4 sm:$0xf]  ;;  %s151_s17 = sld [smem:[#allocation2 + $0x2]]  ;;  %vm282_vm0 = vcmp.lt.s32.totalorder %v75_v32, 512 }
  0x1f   :  { %166 = vpow2.f32 %v149_v2  ;;  %s153_s18 = sld [smem:[#allocation2 + $0x3]]  ;;  %v58_v7 = vld [vmem:[%s319_s3] ss:$2 sm:$0xf] }
  0x20   :  { %v157_v8 = vld [vmem:[%s320_s4 + $0x1] ss:$2 sm:$0xf]  ;;  %v152_v11 = vld [vmem:[%s318_s2 + $0x2] ss:$4 sm:$0xf] }
  0x21   :  { %v158_v10 = vmul.f32 -1.442695, %v157_v8  ;;  %v59_v13 = vmul.f32 0.7, %v58_v7  ;;  %s81_s29 = sld [smem:[#allocation4]] }
  0x22   :  { %v50_v4 = vstv %s48_s1  ;;  %v154_v14 = vld [vmem:[%s318_s2 + $0x3] ss:$4 sm:$0xf]  ;;  %s150_s2 = sld [smem:[#allocation4 + $0x1]] }
  0x23   :  { %v51_v5 = vmul.f32 %v50_v4, %v49_v1  ;;  %v55_v6 = vstv %s146_s10  ;;  %168 = vpow2.f32 %v158_v10  ;;  %v155_v19 = vld [vmem:[%s319_s3 + $0x1] ss:$2 sm:$0xf]  ;;  %s162_s9 = sld [smem:[#allocation4 + $0x81]] }
  0x24   :  { %v56_v9 = vmul.f32 %v147_v3, %v55_v6  ;;  %v92_v15 = vstv %s151_s17  ;;  %v102_v23 = vmul.f32 0.7, %v155_v19  ;;  %s161_s0 = sld [smem:[#allocation4 + $0x80]] }
  0x25   :  { %v93_v17 = vmul.f32 %v152_v11, %v92_v15  ;;  %v97_v18 = vstv %s153_s18 }
  0x26   :  { %v57_v12 = vadd.f32 %v56_v9, %v51_v5  ;;  %v98_v20 = vmul.f32 %v154_v14, %v97_v18 }
  0x27   :  { %v82_v41 = vstv %s81_s29 }
  0x28   :  { %v60_v16 = vmul.f32 0.3, %v57_v12  ;;  %v99_v22 = vadd.f32 %v98_v20, %v93_v17  ;;  %v85_v40 = vstv %s150_s2 }
  0x29   :  { %v127_v45 = vstv %s162_s9 }
  0x2a   :  { %v61_v21 = vadd.f32 %v60_v16, %v59_v13  ;;  %v103_v25 = vmul.f32 0.3, %v99_v22  ;;  %v124_v47 = vstv %s161_s0 }
  0x2c   :  { %v148_v24 = vmul.f32 -1.442695, %v61_v21  ;;  %v167_v26 = vpop.eup %166  ;;  %v104_v27 = vadd.f32 %v103_v25, %v102_v23 }
  0x2d   :  { %v72_v28 = vadd.f32 1.0, %v167_v26 }
  0x2e   :  { %170 = vpow2.f32 %v148_v24  ;;  %v156_v29 = vmul.f32 -1.442695, %v104_v27 }
  0x2f   :  { %172 = vrcp.f32 %v72_v28 }
  0x30   :  { %v169_v30 = vpop.eup %168  ;;  %174 = vpow2.f32 %v156_v29 }
  0x31   :  { %v116_v31 = vadd.f32 1.0, %v169_v30 }
  0x33   :  { %176 = vrcp.f32 %v116_v31 }
  0x3b   :  { %v171_v33 = vpop.eup %170 }
  0x3c   :  { %v65_v34 = vadd.f32 1.0, %v171_v33  ;;  %v173_v36 = vpop.eup %172 }
  0x3d   :  { %v175_v37 = vpop.eup %174  ;;  %80 = vst.msk [vmem:[%s323_s7] ss:$2 sm:$0xf] %vm282_vm0, %v173_v36  ;;  %v86_v42 = vmul.f32 %v173_v36, %v85_v40 }
  0x3e   :  { %178 = vrcp.f32 %v65_v34  ;;  %v108_v38 = vadd.f32 1.0, %v175_v37 }
  0x40   :  { %v177_v39 = vpop.eup %176  ;;  %180 = vrcp.f32 %v108_v38 }
  0x41   :  { %160 = vst.msk [vmem:[%s323_s7 + $0x1] ss:$2 sm:$0xf] %vm282_vm0, %v177_v39  ;;  %v128_v48 = vmul.f32 %v177_v39, %v127_v45 }
  0x4b   :  { %v179_v43 = vpop.eup %178 }
  0x4c   :  { %79 = vst.msk [vmem:[%s322_s6] ss:$2 sm:$0xf] %vm282_vm0, %v179_v43  ;;  %v83_v44 = vmul.f32 %v179_v43, %v82_v41 }
  0x4d   :  { %v181_v49 = vpop.eup %180 }
  0x4e   :  { %v87_v46 = vadd.f32 %v86_v42, %v83_v44  ;;  %159 = vst.msk [vmem:[%s322_s6 + $0x1] ss:$2 sm:$0xf] %vm282_vm0, %v181_v49  ;;  %v125_v50 = vmul.f32 %v181_v49, %v124_v47 }
  0x50   :  { %88 = vst.msk [vmem:[%s321_s5] ss:$2 sm:$0xf] %vm282_vm0, %v87_v46  ;;  %v129_v51 = vadd.f32 %v128_v48, %v125_v50 }
  0x52   :  { %163 = vst.msk [vmem:[%s321_s5 + $0x1] ss:$2 sm:$0xf] %vm282_vm0, %v129_v51 }
  0x53   :  { %144 = vsyncpa [#allocation3], 1 }
  0x54   :  { %145 = vsyncpa [#allocation5], 1 }

// kernel: mm_forward.2
= control target key start
LH: loop header
LB: loop body
LE: loop exit
PB: predicated region body
PF: predicated region fallthrough
CT: control target
= control target key end

     0   :  { %v1775_v0 = vmov 0   ;;  %v1776_v7 = vmov 0.0   ;;  %v53_v15 = vlaneseq  ;;  %vm239_vm12 = vcmask 261120   ;;  %s2453_s3 = inlined_call_operand.vmem [shape: f32[32,1], index: 3, kind: input, shape index: {}]   ;;  %s2454_s2 = inlined_call_operand.vmem [shape: f32[32,1], index: 2, kind: input, shape index: {}]   ;;  %s2455_s5 = inlined_call_operand.vmem [shape: f32[32,1], index: 5, kind: input, shape index: {}]   ;;  %s2456_s6 = inlined_call_operand.vmem [shape: f32[32,1], index: 6, kind: input, shape index: {}]   ;;  %s2457_s1 = inlined_call_operand.vmem [shape: f32[4,512], index: 1, kind: input, shape index: {}]   ;;  %s2458_s0 = inlined_call_operand.<no memory space> [shape: f32[1,1], index: 0, kind: input, shape index: {}]   ;;  %s2459_s4 = inlined_call_operand.vmem [shape: f32[32,32], index: 4, kind: input, shape index: {}]   ;;  %s2460_s7 = inlined_call_operand.vmem [shape: f32[1,4], index: 7, kind: output, shape index: {}]  }
   0x1   :  { %1642 = vset.pattern.permute.xlu1 %v1775_v0  ;;  %1641 = vset.pattern.permute.xlu0 %v1775_v0  ;;  %v43_v1 = vld [vmem:[%s2453_s3 + $0x18] sm:$0xff]  ;;  %v38_v3 = vld [vmem:[%s2454_s2 + $0x10] sm:$0xff]  ;;  %v37_v4 = vld [vmem:[%s2454_s2 + $0x8] sm:$0xff]  ;;  %v1868_v23 = vstv %s2458_s0 }
   0x2   :  { %v39_v2 = vld [vmem:[%s2454_s2 + $0x18] sm:$0xff]  ;;  %151 = vperm.xlu1 %1642, %v43_v1   ;;  %v42_v5 = vld [vmem:[%s2453_s3 + $0x10] sm:$0xff]  ;;  %v36_v6 = vld [vmem:[%s2454_s2] sm:$0xff]  ;;  %316 = vmatprep.mubr.f32.mxu0 %v1776_v7  ;;  %v99_v16 = vshrl.u32 %v53_v15, 7 }
   0x3   :  { %94 = vperm.xlu0 %1641, %v39_v2   ;;  %405 = vmatprep.mubr.f32.mxu1 %v1776_v7  ;;  %v41_v8 = vld [vmem:[%s2453_s3 + $0x8] sm:$0xff]  ;;  %v40_v9 = vld [vmem:[%s2453_s3] sm:$0xff]  ;;  %v50_v12 = vld [vmem:[%s2455_s5 + $0x10] sm:$0xff] }
   0x4   :  { %v48_v10 = vld [vmem:[%s2455_s5] sm:$0xff]  ;;  %v49_v11 = vld [vmem:[%s2455_s5 + $0x8] sm:$0xff]  ;;  %v51_v13 = vld [vmem:[%s2455_s5 + $0x18] sm:$0xff]  ;;  %v104_v17 = vsub.s32 1, %v99_v16  ;;  %v112_v18 = vsub.s32 3, %v99_v16  ;;  %v100_v19 = vsub.s32 0, %v99_v16 }
   0x5   :  { %v1544_v14 = vld [vmem:[%s2456_s6] sm:$0xff]  ;;  %v108_v20 = vsub.s32 2, %v99_v16 }
   0x6   :  { %84 = vperm.xlu1 %1642, %v37_v4   ;;  %v76_v21 = vld [vmem:[%s2457_s1] ss:$4 sm:$0xf]  ;;  %v1612_v22 = vld [vmem:[%s2457_s1 + $0x1] ss:$4 sm:$0xf] }
   0x7   :  { %89 = vperm.xlu0 %1641, %v38_v3   ;;  %v1621_v24 = vld [vmem:[%s2457_s1 + $0x2] ss:$4 sm:$0xf]  ;;  %v1873_v25 = vrot.slane %v76_v21, %v104_v17  ;;  %v1875_v26 = vrot.slane %v76_v21, %v112_v18  ;;  %v1877_v27 = vrot.slane %v76_v21, %v100_v19  ;;  %v1879_v28 = vrot.slane %v76_v21, %v108_v20  ;;  %v1630_v29 = vld [vmem:[%s2457_s1 + $0x3] ss:$4 sm:$0xf] }
   0x8   :  { %v1884_v30 = vrot.slane %v1612_v22, %v104_v17  ;;  %v1886_v31 = vrot.slane %v1612_v22, %v112_v18  ;;  %v1888_v32 = vrot.slane %v1612_v22, %v100_v19  ;;  %v1890_v33 = vrot.slane %v1612_v22, %v108_v20 }
   0x9   :  { %v1892_v34 = vrot.slane %v1621_v24, %v104_v17  ;;  %v1894_v35 = vrot.slane %v1621_v24, %v112_v18  ;;  %v1896_v36 = vrot.slane %v1621_v24, %v100_v19  ;;  %v1898_v37 = vrot.slane %v1621_v24, %v108_v20 }
   0xa   :  { %79 = vperm.xlu1 %1642, %v36_v6   ;;  %v1904_v40 = vrot.slane %v1630_v29, %v104_v17  ;;  %v1906_v41 = vrot.slane %v1630_v29, %v112_v18  ;;  %v1908_v42 = vrot.slane %v1630_v29, %v100_v19  ;;  %v1910_v43 = vrot.slane %v1630_v29, %v108_v20 }
   0xb   :  { %146 = vperm.xlu0 %1641, %v42_v5  }
   0xe   :  { %136 = vperm.xlu1 %1642, %v40_v9  }
   0xf   :  { %141 = vperm.xlu0 %1641, %v41_v8  }
  0x12   :  { %226 = vperm.xlu1 %1642, %v49_v11  }
  0x13   :  { %221 = vperm.xlu0 %1641, %v48_v10  }
  0x16   :  { %236 = vperm.xlu1 %1642, %v51_v13  }
  0x17   :  { %231 = vperm.xlu0 %1641, %v50_v12  }
  0x1a   :  { %1550 = vperm.xlu1 %1642, %v1544_v14  }
  0x7d   :  { %v1900_v38 = vpop.permute.xlu1 %151 }
  0x7e   :  { %v1902_v39 = vpop.permute.xlu0 %94 }
  0x7f   :  { %v131_v44 = vmul.f32 %v1873_v25, %v1902_v39  ;;  %v133_v45 = vmul.f32 %v1875_v26, %v1902_v39  ;;  %v130_v46 = vmul.f32 %v1877_v27, %v1902_v39  ;;  %v132_v47 = vmul.f32 %v1879_v28, %v1902_v39 }
  0x80   :  { %v531_v48 = vmul.f32 %v1884_v30, %v1902_v39  ;;  %v533_v49 = vmul.f32 %v1886_v31, %v1902_v39  ;;  %v530_v50 = vmul.f32 %v1888_v32, %v1902_v39  ;;  %v532_v51 = vmul.f32 %v1890_v33, %v1902_v39 }
  0x81   :  { %v167_v52 = vadd.f32 %v1900_v38, %v131_v44  ;;  %v169_v53 = vadd.f32 %v1900_v38, %v133_v45  ;;  %v166_v54 = vadd.f32 %v1900_v38, %v130_v46  ;;  %v168_v55 = vadd.f32 %v1900_v38, %v132_v47  ;;  %v1934_v57 = vpop.permute.xlu1 %84 }
  0x82   :  { %v1932_v56 = vpop.permute.xlu0 %89  ;;  %v1937_v58 = vadd.f32 %v531_v48, %v1900_v38  ;;  %v1940_v59 = vadd.f32 %v533_v49, %v1900_v38  ;;  %v1943_v60 = vadd.f32 %v530_v50, %v1900_v38  ;;  %v1946_v61 = vadd.f32 %v532_v51, %v1900_v38 }
  0x83   :  { %vm183_vm0 = vcmp.gt.f32.partialorder %v167_v52, 0.0  ;;  %v200_v62 = vmul.f32 %v1868_v23, %v167_v52  ;;  %vm185_vm1 = vcmp.gt.f32.partialorder %v169_v53, 0.0  ;;  %v202_v63 = vmul.f32 %v1868_v23, %v169_v53 }
  0x84   :  { %vm182_vm2 = vcmp.gt.f32.partialorder %v166_v54, 0.0  ;;  %v199_v0 = vmul.f32 %v1868_v23, %v166_v54  ;;  %vm184_vm3 = vcmp.gt.f32.partialorder %v168_v55, 0.0  ;;  %v201_v1 = vmul.f32 %v1868_v23, %v168_v55 }
  0x85   :  { %v216_v2 = vsel %vm183_vm0, %v167_v52, %v200_v62  ;;  %v218_v3 = vsel %vm185_vm1, %v169_v53, %v202_v63  ;;  %v127_v4 = vmul.f32 %v1873_v25, %v1932_v56  ;;  %v129_v5 = vmul.f32 %v1875_v26, %v1932_v56  ;;  %v1964_v14 = vpop.permute.xlu1 %79 }
  0x86   :  { %v1956_v6 = vpop.permute.xlu0 %146  ;;  %276 = vmatprep.subr.mxu0 %v216_v2  ;;  %365 = vmatprep.subr.mxu1 %v218_v3  ;;  %v215_v8 = vsel %vm182_vm2, %v166_v54, %v199_v0  ;;  %v217_v9 = vsel %vm184_vm3, %v168_v55, %v201_v1  ;;  %v126_v10 = vmul.f32 %v1877_v27, %v1932_v56  ;;  %vm563_vm6 = vcmp.gt.f32.partialorder %v1937_v58, 0.0 }
  0x87   :  { %277 = vmatpush1.msra.mxu0 %v215_v8  ;;  %366 = vmatpush1.msra.mxu1 %v217_v9  ;;  %v163_v11 = vadd.f32 %v1956_v6, %v127_v4  ;;  %v165_v12 = vadd.f32 %v1956_v6, %v129_v5  ;;  %v128_v13 = vmul.f32 %v1879_v28, %v1932_v56  ;;  %vm565_vm8 = vcmp.gt.f32.partialorder %v1940_v59, 0.0 }
  0x88   :  { %v162_v16 = vadd.f32 %v1956_v6, %v126_v10  ;;  %v123_v17 = vmul.f32 %v1873_v25, %v1934_v57  ;;  %v125_v18 = vmul.f32 %v1875_v26, %v1934_v57  ;;  %v122_v19 = vmul.f32 %v1877_v27, %v1934_v57 }
  0x89   :  { %vm179_vm4 = vcmp.gt.f32.partialorder %v163_v11, 0.0  ;;  %v196_v20 = vmul.f32 %v1868_v23, %v163_v11  ;;  %vm181_vm5 = vcmp.gt.f32.partialorder %v165_v12, 0.0  ;;  %v198_v21 = vmul.f32 %v1868_v23, %v165_v12  ;;  %v1989_v54 = vpop.permute.xlu1 %136 }
  0x8a   :  { %v1976_v22 = vpop.permute.xlu0 %141  ;;  %vm178_vm7 = vcmp.gt.f32.partialorder %v162_v16, 0.0  ;;  %v195_v24 = vmul.f32 %v1868_v23, %v162_v16  ;;  %v164_v29 = vadd.f32 %v1956_v6, %v128_v13  ;;  %v124_v44 = vmul.f32 %v1879_v28, %v1934_v57 }
  0x8b   :  { %v212_v45 = vsel %vm179_vm4, %v163_v11, %v196_v20  ;;  %v214_v46 = vsel %vm181_vm5, %v165_v12, %v198_v21  ;;  %v159_v47 = vadd.f32 %v1976_v22, %v123_v17  ;;  %v161_v48 = vadd.f32 %v1976_v22, %v125_v18  ;;  %v2020_v21 = vld [vmem:[%s2459_s4] sm:$0xff] }
  0x8c   :  { %278 = vmatprep.subr.mxu0 %v212_v45  ;;  %367 = vmatprep.subr.mxu1 %v214_v46  ;;  %v211_v49 = vsel %vm178_vm7, %v162_v16, %v195_v24  ;;  %vm180_vm9 = vcmp.gt.f32.partialorder %v164_v29, 0.0  ;;  %v197_v50 = vmul.f32 %v1868_v23, %v164_v29  ;;  %v158_v51 = vadd.f32 %v1976_v22, %v122_v19 }
  0x8d   :  { %279 = vmatpush1.msra.mxu0 %v211_v49  ;;  %vm175_vm10 = vcmp.gt.f32.partialorder %v159_v47, 0.0  ;;  %v192_v52 = vmul.f32 %v1868_v23, %v159_v47  ;;  %vm177_vm11 = vcmp.gt.f32.partialorder %v161_v48, 0.0  ;;  %v194_v53 = vmul.f32 %v1868_v23, %v161_v48 }
  0x8e   :  { %v213_v55 = vsel %vm180_vm9, %v164_v29, %v197_v50  ;;  %vm174_vm13 = vcmp.gt.f32.partialorder %v158_v51, 0.0  ;;  %v191_v62 = vmul.f32 %v1868_v23, %v158_v51  ;;  %v160_v63 = vadd.f32 %v1976_v22, %v124_v44 }
  0x8f   :  { %368 = vmatpush1.msra.mxu1 %v213_v55  ;;  %v208_v0 = vsel %vm175_vm10, %v159_v47, %v192_v52  ;;  %v210_v1 = vsel %vm177_vm11, %v161_v48, %v194_v53  ;;  %v119_v2 = vmul.f32 %v1873_v25, %v1964_v14  ;;  %v121_v3 = vmul.f32 %v1875_v26, %v1964_v14  ;;  %v2050_v53 = vld [vmem:[%s2459_s4 + $0x8] sm:$0xff] }
  0x90   :  { %280 = vmatprep.subr.mxu0 %v208_v0  ;;  %369 = vmatprep.subr.mxu1 %v210_v1  ;;  %v207_v4 = vsel %vm174_vm13, %v158_v51, %v191_v62  ;;  %vm176_vm14 = vcmp.gt.f32.partialorder %v160_v63, 0.0  ;;  %v193_v5 = vmul.f32 %v1868_v23, %v160_v63  ;;  %v118_v8 = vmul.f32 %v1877_v27, %v1964_v14 }
  0x91   :  { %281 = vmatpush1.msra.mxu0 %v207_v4  ;;  %v155_v9 = vadd.f32 %v1989_v54, %v119_v2  ;;  %v157_v10 = vadd.f32 %v1989_v54, %v121_v3  ;;  %v120_v25 = vmul.f32 %v1879_v28, %v1964_v14  ;;  %v579_v26 = vmul.f32 %v1937_v58, %v1868_v23 }
  0x92   :  { %v209_v11 = vsel %vm176_vm14, %v160_v63, %v193_v5  ;;  %v154_v12 = vadd.f32 %v1989_v54, %v118_v8  ;;  %v581_v13 = vmul.f32 %v1940_v59, %v1868_v23  ;;  %vm562_vm15 = vcmp.gt.f32.partialorder %v1943_v60, 0.0 }
  0x93   :  { %370 = vmatpush1.msra.mxu1 %v209_v11  ;;  %vm171_vm0 = vcmp.gt.f32.partialorder %v155_v9, 0.0  ;;  %v188_v27 = vmul.f32 %v1868_v23, %v155_v9  ;;  %vm173_vm1 = vcmp.gt.f32.partialorder %v157_v10, 0.0  ;;  %v190_v16 = vmul.f32 %v1868_v23, %v157_v10 }
  0x94   :  { %vm170_vm2 = vcmp.gt.f32.partialorder %v154_v12, 0.0  ;;  %v187_v28 = vmul.f32 %v1868_v23, %v154_v12  ;;  %v156_v17 = vadd.f32 %v1989_v54, %v120_v25  ;;  %v595_v18 = vsel %vm563_vm6, %v1937_v58, %v579_v26  ;;  %v2075_v26 = vld [vmem:[%s2459_s4 + $0x10] sm:$0xff] }
  0x95   :  { %v204_v19 = vsel %vm171_vm0, %v155_v9, %v188_v27  ;;  %v206_v20 = vsel %vm173_vm1, %v157_v10, %v190_v16  ;;  %v597_v24 = vsel %vm565_vm8, %v1940_v59, %v581_v13  ;;  %v578_v29 = vmul.f32 %v1943_v60, %v1868_v23 }
  0x96   :  { %282 = vmatprep.subr.mxu0 %v204_v19  ;;  %371 = vmatprep.subr.mxu1 %v206_v20  ;;  %v203_v44 = vsel %vm170_vm2, %v154_v12, %v187_v28  ;;  %vm172_vm3 = vcmp.gt.f32.partialorder %v156_v17, 0.0  ;;  %v189_v58 = vmul.f32 %v1868_v23, %v156_v17  ;;  %vm564_vm4 = vcmp.gt.f32.partialorder %v1946_v61, 0.0 }
  0x97   :  { %283 = vmatpush1.msra.mxu0 %v203_v44  ;;  %v594_v45 = vsel %vm562_vm15, %v1943_v60, %v578_v29  ;;  %v580_v46 = vmul.f32 %v1946_v61, %v1868_v23  ;;  %v527_v59 = vmul.f32 %v1884_v30, %v1932_v56  ;;  %v529_v47 = vmul.f32 %v1886_v31, %v1932_v56 }
  0x98   :  { %v205_v48 = vsel %vm172_vm3, %v156_v17, %v189_v58  ;;  %1604 = vmatmul.mubr.msk.f32.vlgmr.msra.gmra.mxu0 %vm239_vm12, %v2020_v21  ;;  %622 = vmatprep.subr.mxu0 %v595_v18  ;;  %v526_v49 = vmul.f32 %v1888_v32, %v1932_v56  ;;  %v528_v60 = vmul.f32 %v1890_v33, %v1932_v56 }
  0x99   :  { %372 = vmatpush1.msra.mxu1 %v205_v48  ;;  %623 = vmatpush1.msra.mxu0 %v594_v45  ;;  %v596_v50 = vsel %vm564_vm4, %v1946_v61, %v580_v46  ;;  %v543_v51 = vadd.f32 %v527_v59, %v1956_v6  ;;  %v545_v52 = vadd.f32 %v529_v47, %v1956_v6  ;;  %v2107_v46 = vld [vmem:[%s2459_s4 + $0x18] sm:$0xff] }
  0x9a   :  { %1608 = vmatmul.mubr.msk.f32.vlgmr.msra.gmra.mxu1 %vm239_vm12, %v2020_v21  ;;  %711 = vmatprep.subr.mxu1 %v597_v24  ;;  %v542_v55 = vadd.f32 %v526_v49, %v1956_v6  ;;  %v544_v62 = vadd.f32 %v528_v60, %v1956_v6  ;;  %v523_v61 = vmul.f32 %v1884_v30, %v1934_v57 }
  0x9b   :  { %712 = vmatpush1.msra.mxu1 %v596_v50  ;;  %vm559_vm5 = vcmp.gt.f32.partialorder %v543_v51, 0.0  ;;  %v575_v63 = vmul.f32 %v543_v51, %v1868_v23  ;;  %vm561_vm6 = vcmp.gt.f32.partialorder %v545_v52, 0.0  ;;  %v577_v0 = vmul.f32 %v545_v52, %v1868_v23  ;;  %322 = vmatprep.mubr.f32.mxu0 %v1776_v7 }
  0x9c   :  { %411 = vmatprep.mubr.f32.mxu1 %v1776_v7  ;;  %vm558_vm7 = vcmp.gt.f32.partialorder %v542_v55, 0.0  ;;  %v574_v1 = vmul.f32 %v542_v55, %v1868_v23  ;;  %vm560_vm8 = vcmp.gt.f32.partialorder %v544_v62, 0.0  ;;  %v576_v2 = vmul.f32 %v544_v62, %v1868_v23  ;;  %1605 = vmatmul.mubr.msk.f32.gmra.mxu0 %vm239_vm12, %v2050_v53 }
  0x9d   :  { %v591_v3 = vsel %vm559_vm5, %v543_v51, %v575_v63  ;;  %v593_v4 = vsel %vm561_vm6, %v545_v52, %v577_v0  ;;  %v539_v5 = vadd.f32 %v523_v61, %v1976_v22  ;;  %v525_v8 = vmul.f32 %v1886_v31, %v1934_v57  ;;  %328 = vmatprep.mubr.f32.mxu0 %v1776_v7 }
  0x9e   :  { %624 = vmatprep.subr.mxu0 %v591_v3  ;;  %713 = vmatprep.subr.mxu1 %v593_v4  ;;  %v590_v9 = vsel %vm558_vm7, %v542_v55, %v574_v1  ;;  %v592_v10 = vsel %vm560_vm8, %v544_v62, %v576_v2  ;;  %v522_v25 = vmul.f32 %v1888_v32, %v1934_v57 }
  0x9f   :  { %625 = vmatpush1.msra.mxu0 %v590_v9  ;;  %714 = vmatpush1.msra.mxu1 %v592_v10  ;;  %vm555_vm9 = vcmp.gt.f32.partialorder %v539_v5, 0.0  ;;  %v571_v11 = vmul.f32 %v539_v5, %v1868_v23  ;;  %v541_v12 = vadd.f32 %v525_v8, %v1976_v22  ;;  %v524_v13 = vmul.f32 %v1890_v33, %v1934_v57 }
  0xa0   :  { %1609 = vmatmul.mubr.msk.f32.gmra.mxu1 %vm239_vm12, %v2050_v53  ;;  %v538_v27 = vadd.f32 %v522_v25, %v1976_v22  ;;  %v519_v16 = vmul.f32 %v1884_v30, %v1964_v14  ;;  %v521_v28 = vmul.f32 %v1886_v31, %v1964_v14  ;;  %v518_v17 = vmul.f32 %v1888_v32, %v1964_v14 }
  0xa1   :  { %v587_v18 = vsel %vm555_vm9, %v539_v5, %v571_v11  ;;  %vm557_vm10 = vcmp.gt.f32.partialorder %v541_v12, 0.0  ;;  %v573_v19 = vmul.f32 %v541_v12, %v1868_v23  ;;  %v540_v20 = vadd.f32 %v524_v13, %v1976_v22  ;;  %417 = vmatprep.mubr.f32.mxu1 %v1776_v7  ;;  %1606 = vmatmul.mubr.msk.f32.gmra.mxu0 %vm239_vm12, %v2075_v26 }
  0xa2   :  { %626 = vmatprep.subr.mxu0 %v587_v18  ;;  %vm554_vm11 = vcmp.gt.f32.partialorder %v538_v27, 0.0  ;;  %v570_v30 = vmul.f32 %v538_v27, %v1868_v23  ;;  %v535_v31 = vadd.f32 %v519_v16, %v1989_v54  ;;  %v537_v24 = vadd.f32 %v521_v28, %v1989_v54  ;;  %334 = vmatprep.mubr.f32.mxu0 %v1776_v7 }
  0xa3   :  { %v589_v32 = vsel %vm557_vm10, %v541_v12, %v573_v19  ;;  %vm556_vm13 = vcmp.gt.f32.partialorder %v540_v20, 0.0  ;;  %v572_v29 = vmul.f32 %v540_v20, %v1868_v23  ;;  %v534_v44 = vadd.f32 %v518_v17, %v1989_v54 }
  0xa4   :  { %715 = vmatprep.subr.mxu1 %v589_v32  ;;  %v586_v58 = vsel %vm554_vm11, %v538_v27, %v570_v30  ;;  %vm551_vm14 = vcmp.gt.f32.partialorder %v535_v31, 0.0  ;;  %v567_v45 = vmul.f32 %v535_v31, %v1868_v23  ;;  %vm553_vm15 = vcmp.gt.f32.partialorder %v537_v24, 0.0  ;;  %1610 = vmatmul.mubr.msk.f32.gmra.mxu1 %vm239_vm12, %v2075_v26 }
  0xa5   :  { %627 = vmatpush1.msra.mxu0 %v586_v58  ;;  %v588_v59 = vsel %vm556_vm13, %v540_v20, %v572_v29  ;;  %v569_v47 = vmul.f32 %v537_v24, %v1868_v23  ;;  %vm550_vm0 = vcmp.gt.f32.partialorder %v534_v44, 0.0  ;;  %v566_v48 = vmul.f32 %v534_v44, %v1868_v23  ;;  %423 = vmatprep.mubr.f32.mxu1 %v1776_v7 }
  0xa6   :  { %716 = vmatpush1.msra.mxu1 %v588_v59  ;;  %v583_v49 = vsel %vm551_vm14, %v535_v31, %v567_v45  ;;  %v520_v60 = vmul.f32 %v1890_v33, %v1964_v14  ;;  %v877_v50 = vmul.f32 %v1892_v34, %v1902_v39  ;;  %v879_v51 = vmul.f32 %v1894_v35, %v1902_v39 }
  0xa7   :  { %628 = vmatprep.subr.mxu0 %v583_v49  ;;  %v585_v52 = vsel %vm553_vm15, %v537_v24, %v569_v47  ;;  %v582_v55 = vsel %vm550_vm0, %v534_v44, %v566_v48  ;;  %1607 = vmatmul.mubr.msk.f32.gmra.mxu0 %vm239_vm12, %v2107_v46  ;;  %v876_v62 = vmul.f32 %v1896_v36, %v1902_v39 }
  0xa8   :  { %717 = vmatprep.subr.mxu1 %v585_v52  ;;  %629 = vmatpush1.msra.mxu0 %v582_v55  ;;  %v536_v61 = vadd.f32 %v520_v60, %v1989_v54  ;;  %v893_v33 = vadd.f32 %v877_v50, %v1900_v38  ;;  %v895_v63 = vadd.f32 %v879_v51, %v1900_v38 }
  0xa9   :  { %1611 = vmatmul.mubr.msk.f32.gmra.mxu1 %vm239_vm12, %v2107_v46  ;;  %662 = vmatprep.mubr.f32.mxu0 %v1776_v7  ;;  %v892_v0 = vadd.f32 %v876_v62, %v1900_v38  ;;  %v878_v1 = vmul.f32 %v1898_v37, %v1902_v39  ;;  %v873_v2 = vmul.f32 %v1892_v34, %v1932_v56 }
  0xaa   :  { %vm552_vm1 = vcmp.gt.f32.partialorder %v536_v61, 0.0  ;;  %v568_v3 = vmul.f32 %v536_v61, %v1868_v23  ;;  %vm909_vm2 = vcmp.gt.f32.partialorder %v893_v33, 0.0  ;;  %v925_v4 = vmul.f32 %v893_v33, %v1868_v23  ;;  %751 = vmatprep.mubr.f32.mxu1 %v1776_v7 }
  0xab   :  { %vm911_vm3 = vcmp.gt.f32.partialorder %v895_v63, 0.0  ;;  %v927_v5 = vmul.f32 %v895_v63, %v1868_v23  ;;  %1613 = vmatmul.mubr.msk.f32.vlgmr.msra.gmra.mxu0 %vm239_vm12, %v2020_v21  ;;  %vm908_vm4 = vcmp.gt.f32.partialorder %v892_v0, 0.0  ;;  %v924_v8 = vmul.f32 %v892_v0, %v1868_v23 }
  0xac   :  { %v584_v9 = vsel %vm552_vm1, %v536_v61, %v568_v3  ;;  %v941_v10 = vsel %vm909_vm2, %v893_v33, %v925_v4  ;;  %v894_v25 = vadd.f32 %v878_v1, %v1900_v38  ;;  %v889_v11 = vadd.f32 %v873_v2, %v1956_v6  ;;  %668 = vmatprep.mubr.f32.mxu0 %v1776_v7 }
  0xad   :  { %718 = vmatpush1.msra.mxu1 %v584_v9  ;;  %968 = vmatprep.subr.mxu0 %v941_v10  ;;  %v943_v12 = vsel %vm911_vm3, %v895_v63, %v927_v5  ;;  %v940_v13 = vsel %vm908_vm4, %v892_v0, %v924_v8  ;;  %v875_v27 = vmul.f32 %v1894_v35, %v1932_v56 }
  0xae   :  { %1057 = vmatprep.subr.mxu1 %v943_v12  ;;  %1617 = vmatmul.mubr.msk.f32.vlgmr.msra.gmra.mxu1 %vm239_vm12, %v2020_v21  ;;  %vm910_vm5 = vcmp.gt.f32.partialorder %v894_v25, 0.0  ;;  %v926_v16 = vmul.f32 %v894_v25, %v1868_v23  ;;  %vm905_vm6 = vcmp.gt.f32.partialorder %v889_v11, 0.0  ;;  %v921_v28 = vmul.f32 %v889_v11, %v1868_v23 }
  0xaf   :  { %969 = vmatpush1.msra.mxu0 %v940_v13  ;;  %v891_v17 = vadd.f32 %v875_v27, %v1956_v6  ;;  %v872_v18 = vmul.f32 %v1896_v36, %v1932_v56  ;;  %v874_v19 = vmul.f32 %v1898_v37, %v1932_v56  ;;  %757 = vmatprep.mubr.f32.mxu1 %v1776_v7 }
  0xb0   :  { %v942_v20 = vsel %vm910_vm5, %v894_v25, %v926_v16  ;;  %v937_v30 = vsel %vm905_vm6, %v889_v11, %v921_v28  ;;  %v869_v31 = vmul.f32 %v1892_v34, %v1934_v57  ;;  %v871_v24 = vmul.f32 %v1894_v35, %v1934_v57  ;;  %1614 = vmatmul.mubr.msk.f32.gmra.mxu0 %vm239_vm12, %v2050_v53 }
  0xb1   :  { %1058 = vmatpush1.msra.mxu1 %v942_v20  ;;  %970 = vmatprep.subr.mxu0 %v937_v30  ;;  %vm907_vm7 = vcmp.gt.f32.partialorder %v891_v17, 0.0  ;;  %v923_v32 = vmul.f32 %v891_v17, %v1868_v23  ;;  %v888_v29 = vadd.f32 %v872_v18, %v1956_v6  ;;  %v890_v44 = vadd.f32 %v874_v19, %v1956_v6 }
  0xb2   :  { %v885_v58 = vadd.f32 %v869_v31, %v1976_v22  ;;  %v887_v45 = vadd.f32 %v871_v24, %v1976_v22  ;;  %1618 = vmatmul.mubr.msk.f32.gmra.mxu1 %vm239_vm12, %v2050_v53  ;;  %v868_v59 = vmul.f32 %v1896_v36, %v1934_v57  ;;  %v870_v47 = vmul.f32 %v1898_v37, %v1934_v57 }
  0xb3   :  { %v939_v48 = vsel %vm907_vm7, %v891_v17, %v923_v32  ;;  %vm904_vm8 = vcmp.gt.f32.partialorder %v888_v29, 0.0  ;;  %v920_v49 = vmul.f32 %v888_v29, %v1868_v23  ;;  %vm906_vm9 = vcmp.gt.f32.partialorder %v890_v44, 0.0  ;;  %674 = vmatprep.mubr.f32.mxu0 %v1776_v7  ;;  %763 = vmatprep.mubr.f32.mxu1 %v1776_v7 }
  0xb4   :  { %1059 = vmatprep.subr.mxu1 %v939_v48  ;;  %v922_v60 = vmul.f32 %v890_v44, %v1868_v23  ;;  %vm901_vm10 = vcmp.gt.f32.partialorder %v885_v58, 0.0  ;;  %v917_v50 = vmul.f32 %v885_v58, %v1868_v23  ;;  %vm903_vm11 = vcmp.gt.f32.partialorder %v887_v45, 0.0  ;;  %1615 = vmatmul.mubr.msk.f32.gmra.mxu0 %vm239_vm12, %v2075_v26 }
  0xb5   :  { %v936_v51 = vsel %vm904_vm8, %v888_v29, %v920_v49  ;;  %v919_v52 = vmul.f32 %v887_v45, %v1868_v23  ;;  %v884_v55 = vadd.f32 %v868_v59, %v1976_v22  ;;  %v886_v62 = vadd.f32 %v870_v47, %v1976_v22  ;;  %680 = vmatprep.mubr.f32.mxu0 %v1776_v7 }
  0xb6   :  { %971 = vmatpush1.msra.mxu0 %v936_v51  ;;  %v938_v61 = vsel %vm906_vm9, %v890_v44, %v922_v60  ;;  %v933_v33 = vsel %vm901_vm10, %v885_v58, %v917_v50  ;;  %v865_v63 = vmul.f32 %v1892_v34, %v1964_v14  ;;  %v867_v0 = vmul.f32 %v1894_v35, %v1964_v14 }
  0xb7   :  { %1060 = vmatpush1.msra.mxu1 %v938_v61  ;;  %972 = vmatprep.subr.mxu0 %v933_v33  ;;  %v935_v1 = vsel %vm903_vm11, %v887_v45, %v919_v52  ;;  %vm900_vm13 = vcmp.gt.f32.partialorder %v884_v55, 0.0  ;;  %v916_v2 = vmul.f32 %v884_v55, %v1868_v23  ;;  %vm902_vm14 = vcmp.gt.f32.partialorder %v886_v62, 0.0 }
  0xb8   :  { %1061 = vmatprep.subr.mxu1 %v935_v1  ;;  %v918_v3 = vmul.f32 %v886_v62, %v1868_v23  ;;  %v881_v4 = vadd.f32 %v865_v63, %v1989_v54  ;;  %v883_v5 = vadd.f32 %v867_v0, %v1989_v54  ;;  %v864_v34 = vmul.f32 %v1896_v36, %v1964_v14 }
  0xb9   :  { %v932_v8 = vsel %vm900_vm13, %v884_v55, %v916_v2  ;;  %v866_v35 = vmul.f32 %v1898_v37, %v1964_v14  ;;  %v1223_v9 = vmul.f32 %v1904_v40, %v1902_v39  ;;  %v1225_v10 = vmul.f32 %v1906_v41, %v1902_v39  ;;  %1619 = vmatmul.mubr.msk.f32.gmra.mxu1 %vm239_vm12, %v2075_v26 }
  0xba   :  { %973 = vmatpush1.msra.mxu0 %v932_v8  ;;  %v934_v25 = vsel %vm902_vm14, %v886_v62, %v918_v3  ;;  %vm897_vm15 = vcmp.gt.f32.partialorder %v881_v4, 0.0  ;;  %v913_v11 = vmul.f32 %v881_v4, %v1868_v23  ;;  %vm899_vm0 = vcmp.gt.f32.partialorder %v883_v5, 0.0  ;;  %769 = vmatprep.mubr.f32.mxu1 %v1776_v7 }
  0xbb   :  { %1062 = vmatpush1.msra.mxu1 %v934_v25  ;;  %v915_v36 = vmul.f32 %v883_v5, %v1868_v23  ;;  %v880_v37 = vadd.f32 %v864_v34, %v1989_v54  ;;  %v882_v12 = vadd.f32 %v866_v35, %v1989_v54  ;;  %v1239_v13 = vadd.f32 %v1223_v9, %v1900_v38 }
  0xbc   :  { %v929_v27 = vsel %vm897_vm15, %v881_v4, %v913_v11  ;;  %v1241_v16 = vadd.f32 %v1225_v10, %v1900_v38  ;;  %1616 = vmatmul.mubr.msk.f32.gmra.mxu0 %vm239_vm12, %v2107_v46  ;;  %v1222_v28 = vmul.f32 %v1908_v42, %v1902_v39  ;;  %v1224_v17 = vmul.f32 %v1910_v43, %v1902_v39 }
  0xbd   :  { %974 = vmatprep.subr.mxu0 %v929_v27  ;;  %v931_v18 = vsel %vm899_vm0, %v883_v5, %v915_v36  ;;  %vm896_vm1 = vcmp.gt.f32.partialorder %v880_v37, 0.0  ;;  %v912_v19 = vmul.f32 %v880_v37, %v1868_v23  ;;  %vm898_vm2 = vcmp.gt.f32.partialorder %v882_v12, 0.0  ;;  %1620 = vmatmul.mubr.msk.f32.gmra.mxu1 %vm239_vm12, %v2107_v46 }
  0xbe   :  { %1063 = vmatprep.subr.mxu1 %v931_v18  ;;  %v914_v20 = vmul.f32 %v882_v12, %v1868_v23  ;;  %vm1255_vm3 = vcmp.gt.f32.partialorder %v1239_v13, 0.0  ;;  %v1271_v30 = vmul.f32 %v1239_v13, %v1868_v23  ;;  %vm1257_vm4 = vcmp.gt.f32.partialorder %v1241_v16, 0.0  ;;  %1008 = vmatprep.mubr.f32.mxu0 %v1776_v7 }
  0xbf   :  { %v928_v31 = vsel %vm896_vm1, %v880_v37, %v912_v19  ;;  %v1273_v39 = vmul.f32 %v1241_v16, %v1868_v23  ;;  %1097 = vmatprep.mubr.f32.mxu1 %v1776_v7  ;;  %v1238_v24 = vadd.f32 %v1222_v28, %v1900_v38  ;;  %v1240_v32 = vadd.f32 %v1224_v17, %v1900_v38 }
  0xc0   :  { %975 = vmatpush1.msra.mxu0 %v928_v31  ;;  %v930_v29 = vsel %vm898_vm2, %v882_v12, %v914_v20  ;;  %v1287_v44 = vsel %vm1255_vm3, %v1239_v13, %v1271_v30  ;;  %v1219_v58 = vmul.f32 %v1904_v40, %v1932_v56  ;;  %v1221_v45 = vmul.f32 %v1906_v41, %v1932_v56 }
  0xc1   :  { %1064 = vmatpush1.msra.mxu1 %v930_v29  ;;  %1314 = vmatprep.subr.mxu0 %v1287_v44  ;;  %v1289_v59 = vsel %vm1257_vm4, %v1241_v16, %v1273_v39  ;;  %vm1254_vm5 = vcmp.gt.f32.partialorder %v1238_v24, 0.0  ;;  %v1270_v47 = vmul.f32 %v1238_v24, %v1868_v23  ;;  %vm1256_vm6 = vcmp.gt.f32.partialorder %v1240_v32, 0.0 }
  0xc2   :  { %1403 = vmatprep.subr.mxu1 %v1289_v59  ;;  %1622 = vmatmul.mubr.msk.f32.vlgmr.msra.gmra.mxu0 %vm239_vm12, %v2020_v21  ;;  %v1272_v38 = vmul.f32 %v1240_v32, %v1868_v23  ;;  %v1235_v48 = vadd.f32 %v1219_v58, %v1956_v6  ;;  %v1237_v49 = vadd.f32 %v1221_v45, %v1956_v6  ;;  %vm31_vm4 = vcmask 31744  }
  0xc3   :  { %1626 = vmatmul.mubr.msk.f32.vlgmr.msra.gmra.mxu1 %vm239_vm12, %v2020_v21  ;;  %v1286_v60 = vsel %vm1254_vm5, %v1238_v24, %v1270_v47  ;;  %v1218_v50 = vmul.f32 %v1908_v42, %v1932_v56  ;;  %v1220_v51 = vmul.f32 %v1910_v43, %v1932_v56  ;;  %1014 = vmatprep.mubr.f32.mxu0 %v1776_v7  ;;  %v2331_v24 = vpop.permute.xlu1 %226  ;;  %vm490_vm5 = vcmask 7168  }
  0xc4   :  { %1315 = vmatpush1.msra.mxu0 %v1286_v60  ;;  %v1288_v52 = vsel %vm1256_vm6, %v1240_v32, %v1272_v38  ;;  %vm1251_vm7 = vcmp.gt.f32.partialorder %v1235_v48, 0.0  ;;  %v1267_v55 = vmul.f32 %v1235_v48, %v1868_v23  ;;  %vm1253_vm8 = vcmp.gt.f32.partialorder %v1237_v49, 0.0  ;;  %1103 = vmatprep.mubr.f32.mxu1 %v1776_v7  ;;  %32 = vst.msk [vmem:[#allocation2] sm:$0xff] %vm31_vm4, %v1776_v7 }
  0xc5   :  { %1404 = vmatpush1.msra.mxu1 %v1288_v52  ;;  %v1269_v62 = vmul.f32 %v1237_v49, %v1868_v23  ;;  %v1234_v61 = vadd.f32 %v1218_v50, %v1956_v6  ;;  %v1236_v33 = vadd.f32 %v1220_v51, %v1956_v6  ;;  %v1215_v56 = vmul.f32 %v1904_v40, %v1934_v57 }
  0xc6   :  { %v1283_v63 = vsel %vm1251_vm7, %v1235_v48, %v1267_v55  ;;  %v1217_v0 = vmul.f32 %v1906_v41, %v1934_v57  ;;  %1623 = vmatmul.mubr.msk.f32.gmra.mxu0 %vm239_vm12, %v2050_v53  ;;  %v1214_v1 = vmul.f32 %v1908_v42, %v1934_v57  ;;  %v1216_v2 = vmul.f32 %v1910_v43, %v1934_v57 }
  0xc7   :  { %1316 = vmatprep.subr.mxu0 %v1283_v63  ;;  %v1285_v3 = vsel %vm1253_vm8, %v1237_v49, %v1269_v62  ;;  %vm1250_vm9 = vcmp.gt.f32.partialorder %v1234_v61, 0.0  ;;  %v1266_v6 = vmul.f32 %v1234_v61, %v1868_v23  ;;  %vm1252_vm10 = vcmp.gt.f32.partialorder %v1236_v33, 0.0  ;;  %1627 = vmatmul.mubr.msk.f32.gmra.mxu1 %vm239_vm12, %v2050_v53  ;;  %33 = vst.msk [vmem:[#allocation2 + $0x8] sm:$0xff] %vm31_vm4, %v1776_v7 }
  0xc8   :  { %1405 = vmatprep.subr.mxu1 %v1285_v3  ;;  %v1268_v4 = vmul.f32 %v1236_v33, %v1868_v23  ;;  %v1231_v5 = vadd.f32 %v1215_v56, %v1976_v22  ;;  %v1233_v34 = vadd.f32 %v1217_v0, %v1976_v22  ;;  %v1230_v8 = vadd.f32 %v1214_v1, %v1976_v22  ;;  %v2346_v0 = vpop.permute.xlu1 %236 }
  0xc9   :  { %v1282_v35 = vsel %vm1250_vm9, %v1234_v61, %v1266_v6  ;;  %v1232_v57 = vadd.f32 %v1216_v2, %v1976_v22  ;;  %v1211_v9 = vmul.f32 %v1904_v40, %v1964_v14  ;;  %v1213_v10 = vmul.f32 %v1906_v41, %v1964_v14  ;;  %1020 = vmatprep.mubr.f32.mxu0 %v1776_v7 }
  0xca   :  { %1317 = vmatpush1.msra.mxu0 %v1282_v35  ;;  %v1284_v25 = vsel %vm1252_vm10, %v1236_v33, %v1268_v4  ;;  %vm1247_vm11 = vcmp.gt.f32.partialorder %v1231_v5, 0.0  ;;  %v1263_v11 = vmul.f32 %v1231_v5, %v1868_v23  ;;  %vm1249_vm13 = vcmp.gt.f32.partialorder %v1233_v34, 0.0  ;;  %1109 = vmatprep.mubr.f32.mxu1 %v1776_v7  ;;  %34 = vst.msk [vmem:[#allocation2 + $0x10] sm:$0xff] %vm31_vm4, %v1776_v7 }
  0xcb   :  { %1406 = vmatpush1.msra.mxu1 %v1284_v25  ;;  %v1265_v36 = vmul.f32 %v1233_v34, %v1868_v23  ;;  %vm1246_vm14 = vcmp.gt.f32.partialorder %v1230_v8, 0.0  ;;  %v1262_v22 = vmul.f32 %v1230_v8, %v1868_v23  ;;  %vm1248_vm15 = vcmp.gt.f32.partialorder %v1232_v57, 0.0  ;;  %1624 = vmatmul.mubr.msk.f32.gmra.mxu0 %vm239_vm12, %v2075_v26  ;;  %35 = vst.msk [vmem:[#allocation2 + $0x18] sm:$0xff] %vm31_vm4, %v1776_v7 }
  0xcc   :  { %v1279_v40 = vsel %vm1247_vm11, %v1231_v5, %v1263_v11  ;;  %v1264_v41 = vmul.f32 %v1232_v57, %v1868_v23  ;;  %v1227_v37 = vadd.f32 %v1211_v9, %v1989_v54  ;;  %v1229_v12 = vadd.f32 %v1213_v10, %v1989_v54  ;;  %1628 = vmatmul.mubr.msk.f32.gmra.mxu1 %vm239_vm12, %v2075_v26 }
  0xcd   :  { %1318 = vmatprep.subr.mxu0 %v1279_v40  ;;  %v1281_v13 = vsel %vm1249_vm13, %v1233_v34, %v1265_v36  ;;  %v1278_v27 = vsel %vm1246_vm14, %v1230_v8, %v1262_v22  ;;  %v1210_v16 = vmul.f32 %v1908_v42, %v1964_v14  ;;  %v1212_v28 = vmul.f32 %v1910_v43, %v1964_v14 }
  0xce   :  { %1407 = vmatprep.subr.mxu1 %v1281_v13  ;;  %1319 = vmatpush1.msra.mxu0 %v1278_v27  ;;  %v1280_v17 = vsel %vm1248_vm15, %v1232_v57, %v1264_v41  ;;  %vm1243_vm0 = vcmp.gt.f32.partialorder %v1227_v37, 0.0  ;;  %v1259_v18 = vmul.f32 %v1227_v37, %v1868_v23  ;;  %vm1245_vm1 = vcmp.gt.f32.partialorder %v1229_v12, 0.0 }
  0xcf   :  { %1408 = vmatpush1.msra.mxu1 %v1280_v17  ;;  %v1261_v19 = vmul.f32 %v1229_v12, %v1868_v23  ;;  %v1226_v20 = vadd.f32 %v1210_v16, %v1989_v54  ;;  %v1228_v30 = vadd.f32 %v1212_v28, %v1989_v54  ;;  %1026 = vmatprep.mubr.f32.mxu0 %v1776_v7  ;;  %v54_v49 = vand.u32 127, %v53_v15 }
  0xd0   :  { %v1275_v42 = vsel %vm1243_vm0, %v1227_v37, %v1259_v18  ;;  %1115 = vmatprep.mubr.f32.mxu1 %v1776_v7  ;;  %1625 = vmatmul.mubr.msk.f32.gmra.mxu0 %vm239_vm12, %v2107_v46  ;;  %vm836_vm6 = vcmask 15368   ;;  %vm1182_vm7 = vcmask 23568   ;;  %vm1528_vm8 = vcmask 31768  }
  0xd1   :  { %1320 = vmatprep.subr.mxu0 %v1275_v42  ;;  %v1277_v43 = vsel %vm1245_vm1, %v1229_v12, %v1261_v19  ;;  %vm1242_vm2 = vcmp.gt.f32.partialorder %v1226_v20, 0.0  ;;  %v1258_v14 = vmul.f32 %v1226_v20, %v1868_v23  ;;  %vm1244_vm3 = vcmp.gt.f32.partialorder %v1228_v30, 0.0  ;;  %1629 = vmatmul.mubr.msk.f32.gmra.mxu1 %vm239_vm12, %v2107_v46 }
  0xd2   :  { %1409 = vmatprep.subr.mxu1 %v1277_v43  ;;  %v1260_v54 = vmul.f32 %v1228_v30, %v1868_v23  ;;  %1354 = vmatprep.mubr.f32.mxu0 %v1776_v7  ;;  %v2328_v23 = vpop.permute.xlu0 %221  ;;  %vm1597_vm9 = vcmask 24576  }
  0xd3   :  { %v1274_v31 = vsel %vm1242_vm2, %v1226_v20, %v1258_v14  ;;  %1443 = vmatprep.mubr.f32.mxu1 %v1776_v7 }
  0xd4   :  { %1321 = vmatpush1.msra.mxu0 %v1274_v31  ;;  %v1276_v39 = vsel %vm1244_vm3, %v1228_v30, %v1260_v54 }
  0xd5   :  { %1410 = vmatpush1.msra.mxu1 %v1276_v39  ;;  %1631 = vmatmul.mubr.msk.f32.vlgmr.msra.gmra.mxu0 %vm239_vm12, %v2020_v21 }
  0xd6   :  { %1635 = vmatmul.mubr.msk.f32.vlgmr.msra.gmra.mxu1 %vm239_vm12, %v2020_v21  ;;  %1360 = vmatprep.mubr.f32.mxu0 %v1776_v7  ;;  %v2339_v60 = vpop.permute.xlu0 %231 }
  0xd7   :  { %1449 = vmatprep.mubr.f32.mxu1 %v1776_v7 }
  0xd9   :  { %1632 = vmatmul.mubr.msk.f32.gmra.mxu0 %vm239_vm12, %v2050_v53 }
  0xda   :  { %1636 = vmatmul.mubr.msk.f32.gmra.mxu1 %vm239_vm12, %v2050_v53  ;;  %1366 = vmatprep.mubr.f32.mxu0 %v1776_v7 }
  0xdb   :  { %1455 = vmatprep.mubr.f32.mxu1 %v1776_v7 }
  0xdd   :  { %1633 = vmatmul.mubr.msk.f32.gmra.mxu0 %vm239_vm12, %v2075_v26 }
  0xde   :  { %1637 = vmatmul.mubr.msk.f32.gmra.mxu1 %vm239_vm12, %v2075_v26  ;;  %1372 = vmatprep.mubr.f32.mxu0 %v1776_v7 }
  0xdf   :  { %1461 = vmatprep.mubr.f32.mxu1 %v1776_v7 }
  0xe1   :  { %1634 = vmatmul.mubr.msk.f32.gmra.mxu0 %vm239_vm12, %v2107_v46 }
  0xe2   :  { %1638 = vmatmul.mubr.msk.f32.gmra.mxu1 %vm239_vm12, %v2107_v46  ;;  %vm64_vm12 = vcmp.lt.s32.totalorder %v54_v49, 8 }
  0xe3   :  { %v2350_v6 = vsel %vm64_vm12, 1.0, %v1776_v7 }
 0x158   :  { %v318_v21 = vpop.f32.mrf.mxu0 }
 0x159   :  { %v319_v53 = vadd.f32 %v318_v21, %v2328_v23 }
 0x15a   :  { %v407_v26 = vpop.f32.mrf.mxu1  ;;  %v320_v46 = vpop.f32.mrf.mxu0 }
 0x15b   :  { %1643 = vtanh.f32 %v319_v53  ;;  %v408_v32 = vadd.f32 %v407_v26, %v2328_v23  ;;  %v321_v29 = vadd.f32 %v320_v46, %v2328_v23 }
 0x15c   :  { %v409_v44 = vpop.f32.mrf.mxu1  ;;  %v324_v58 = vpop.f32.mrf.mxu0 }
 0x15d   :  { %1645 = vtanh.f32 %v408_v32  ;;  %v410_v45 = vadd.f32 %v409_v44, %v2328_v23  ;;  %v325_v59 = vadd.f32 %v324_v58, %v2331_v24 }
 0x15e   :  { %1647 = vtanh.f32 %v321_v29  ;;  %v326_v47 = vpop.f32.mrf.mxu0 }
 0x15f   :  { %1649 = vtanh.f32 %v410_v45  ;;  %v327_v38 = vadd.f32 %v326_v47, %v2331_v24 }
 0x160   :  { %1651 = vtanh.f32 %v325_v59  ;;  %v413_v48 = vpop.f32.mrf.mxu1 }
 0x161   :  { %v414_v50 = vadd.f32 %v413_v48, %v2331_v24  ;;  %1653 = vtanh.f32 %v327_v38  ;;  %v330_v51 = vpop.f32.mrf.mxu0 }
 0x162   :  { %v415_v52 = vpop.f32.mrf.mxu1  ;;  %v331_v55 = vadd.f32 %v330_v51, %v2339_v60 }
 0x163   :  { %1655 = vtanh.f32 %v414_v50  ;;  %v416_v62 = vadd.f32 %v415_v52, %v2331_v24  ;;  %v332_v61 = vpop.f32.mrf.mxu0 }
 0x164   :  { %1657 = vtanh.f32 %v331_v55  ;;  %v419_v33 = vpop.f32.mrf.mxu1  ;;  %v333_v56 = vadd.f32 %v332_v61, %v2339_v60 }
 0x165   :  { %1659 = vtanh.f32 %v416_v62  ;;  %v420_v15 = vadd.f32 %v419_v33, %v2339_v60 }
 0x166   :  { %1661 = vtanh.f32 %v333_v56  ;;  %v421_v63 = vpop.f32.mrf.mxu1 }
 0x167   :  { %1663 = vtanh.f32 %v420_v15  ;;  %v422_v1 = vadd.f32 %v421_v63, %v2339_v60  ;;  %v336_v2 = vpop.f32.mrf.mxu0 }
 0x168   :  { %v1644_v3 = vpop.eup %1643  ;;  %v337_v4 = vadd.f32 %v336_v2, %v2346_v0 }
 0x169   :  { %1665 = vtanh.f32 %v422_v1  ;;  %v425_v5 = vpop.f32.mrf.mxu1  ;;  %v338_v34 = vpop.f32.mrf.mxu0  ;;  %v446_v11 = vmul.f32 %v1644_v3, %v2350_v6 }
 0x16a   :  { %v1646_v8 = vpop.eup %1645  ;;  %v426_v35 = vadd.f32 %v425_v5, %v2346_v0  ;;  %v339_v57 = vadd.f32 %v338_v34, %v2346_v0  ;;  %1667 = vtanh.f32 %v337_v4 }
 0x16b   :  { %v1648_v9 = vpop.eup %1647  ;;  %v427_v10 = vpop.f32.mrf.mxu1  ;;  %v448_v13 = vmul.f32 0.0, %v1646_v8 }
 0x16c   :  { %v664_v25 = vpop.f32.mrf.mxu0  ;;  %v1650_v36 = vpop.eup %1649  ;;  %v447_v22 = vmul.f32 0.0, %v1648_v9  ;;  %1669 = vtanh.f32 %v426_v35  ;;  %v428_v7 = vadd.f32 %v427_v10, %v2346_v0 }
 0x16d   :  { %v665_v40 = vadd.f32 %v664_v25, %v2328_v23  ;;  %v1652_v41 = vpop.eup %1651  ;;  %1671 = vtanh.f32 %v339_v57  ;;  %v449_v42 = vmul.f32 0.0, %v1650_v36 }
 0x16e   :  { %v666_v37 = vpop.f32.mrf.mxu0  ;;  %v1654_v12 = vpop.eup %1653  ;;  %1673 = vtanh.f32 %v428_v7  ;;  %v466_v28 = vadd.f32 %v447_v22, %v446_v11  ;;  %v450_v14 = vmul.f32 %v1652_v41, %v2350_v6 }
 0x16f   :  { %v753_v27 = vpop.f32.mrf.mxu1  ;;  %v667_v16 = vadd.f32 %v666_v37, %v2328_v23  ;;  %v451_v17 = vmul.f32 0.0, %v1654_v12  ;;  %1675 = vtanh.f32 %v665_v40 }
 0x170   :  { %v754_v18 = vadd.f32 %v753_v27, %v2328_v23  ;;  %v1656_v19 = vpop.eup %1655  ;;  %v670_v30 = vpop.f32.mrf.mxu0  ;;  %v467_v43 = vadd.f32 %v466_v28, %v448_v13 }
 0x171   :  { %1677 = vtanh.f32 %v667_v16  ;;  %v755_v20 = vpop.f32.mrf.mxu1  ;;  %v1658_v54 = vpop.eup %1657  ;;  %v671_v39 = vadd.f32 %v670_v30, %v2331_v24  ;;  %v452_v53 = vmul.f32 0.0, %v1656_v19  ;;  %v471_v29 = vadd.f32 %v451_v17, %v450_v14 }
 0x172   :  { %1679 = vtanh.f32 %v754_v18  ;;  %v756_v31 = vadd.f32 %v755_v20, %v2328_v23  ;;  %v1660_v21 = vpop.eup %1659  ;;  %v672_v46 = vpop.f32.mrf.mxu0  ;;  %v468_v32 = vadd.f32 %v467_v43, %v449_v42  ;;  %v454_v59 = vmul.f32 %v1658_v54, %v2350_v6 }
 0x173   :  { %v759_v26 = vpop.f32.mrf.mxu1  ;;  %v1662_v44 = vpop.eup %1661  ;;  %v673_v45 = vadd.f32 %v672_v46, %v2331_v24  ;;  %v453_v50 = vmul.f32 0.0, %v1660_v21  ;;  %v472_v51 = vadd.f32 %v471_v29, %v452_v53 }
 0x174   :  { %1681 = vtanh.f32 %v756_v31  ;;  %v760_v58 = vadd.f32 %v759_v26, %v2331_v24  ;;  %v1664_v47 = vpop.eup %1663  ;;  %v455_v38 = vmul.f32 0.0, %v1662_v44  ;;  %v676_v49 = vpop.f32.mrf.mxu0  ;;  %469 = vadd.xlane.f32.xlu0 %v468_v32 }
 0x175   :  { %1683 = vtanh.f32 %v671_v39  ;;  %v761_v48 = vpop.f32.mrf.mxu1  ;;  %v677_v55 = vadd.f32 %v676_v49, %v2339_v60  ;;  %v456_v61 = vmul.f32 0.0, %v1664_v47  ;;  %v473_v56 = vadd.f32 %v472_v51, %v453_v50 }
 0x176   :  { %1685 = vtanh.f32 %v760_v58  ;;  %v762_v52 = vadd.f32 %v761_v48, %v2331_v24  ;;  %v1666_v62 = vpop.eup %1665  ;;  %v678_v33 = vpop.f32.mrf.mxu0  ;;  %v476_v15 = vadd.f32 %v455_v38, %v454_v59 }
 0x177   :  { %1687 = vtanh.f32 %v673_v45  ;;  %v679_v63 = vadd.f32 %v678_v33, %v2339_v60  ;;  %v1668_v1 = vpop.eup %1667  ;;  %474 = vadd.xlane.f32.xlu1 %v473_v56  ;;  %v457_v2 = vmul.f32 0.0, %v1666_v62 }
 0x178   :  { %1689 = vtanh.f32 %v762_v52  ;;  %v477_v3 = vadd.f32 %v476_v15, %v456_v61  ;;  %v458_v25 = vmul.f32 %v1668_v1, %v2350_v6 }
 0x179   :  { %1691 = vtanh.f32 %v677_v55  ;;  %v1670_v4 = vpop.eup %1669  ;;  %v765_v5 = vpop.f32.mrf.mxu1 }
 0x17a   :  { %1693 = vtanh.f32 %v679_v63  ;;  %v1672_v34 = vpop.eup %1671  ;;  %v766_v8 = vadd.f32 %v765_v5, %v2339_v60  ;;  %v478_v35 = vadd.f32 %v477_v3, %v457_v2  ;;  %v460_v40 = vmul.f32 0.0, %v1670_v4 }
 0x17b   :  { %v1674_v57 = vpop.eup %1673  ;;  %v459_v9 = vmul.f32 0.0, %v1672_v34  ;;  %v767_v10 = vpop.f32.mrf.mxu1 }
 0x17c   :  { %v1676_v11 = vpop.eup %1675  ;;  %1695 = vtanh.f32 %v766_v8  ;;  %v768_v36 = vadd.f32 %v767_v10, %v2339_v60  ;;  %v682_v22 = vpop.f32.mrf.mxu0  ;;  %479 = vadd.xlane.f32.xlu0 %v478_v35  ;;  %v461_v20 = vmul.f32 0.0, %v1674_v57 }
 0x17d   :  { %v683_v41 = vadd.f32 %v682_v22, %v2346_v0  ;;  %v771_v37 = vpop.f32.mrf.mxu1  ;;  %v481_v12 = vadd.f32 %v459_v9, %v458_v25  ;;  %v792_v17 = vmul.f32 %v1676_v11, %v2350_v6 }
 0x17e   :  { %v1678_v7 = vpop.eup %1677  ;;  %1697 = vtanh.f32 %v768_v36  ;;  %v772_v16 = vadd.f32 %v771_v37, %v2346_v0  ;;  %v684_v28 = vpop.f32.mrf.mxu0 }
 0x17f   :  { %v1680_v13 = vpop.eup %1679  ;;  %v793_v27 = vmul.f32 0.0, %v1678_v7  ;;  %1699 = vtanh.f32 %v683_v41  ;;  %v685_v18 = vadd.f32 %v684_v28, %v2346_v0  ;;  %v773_v19 = vpop.f32.mrf.mxu1  ;;  %v482_v30 = vadd.f32 %v481_v12, %v460_v40 }
 0x180   :  { %v794_v43 = vmul.f32 0.0, %v1680_v13  ;;  %1701 = vtanh.f32 %v772_v16  ;;  %v774_v14 = vadd.f32 %v773_v19, %v2346_v0 }
 0x181   :  { %v1682_v42 = vpop.eup %1681  ;;  %v812_v54 = vadd.f32 %v793_v27, %v792_v17  ;;  %1703 = vtanh.f32 %v685_v18  ;;  %v483_v39 = vadd.f32 %v482_v30, %v461_v20 }
 0x182   :  { %v1684_v31 = vpop.eup %1683  ;;  %v1010_v53 = vpop.f32.mrf.mxu0  ;;  %v795_v26 = vmul.f32 0.0, %v1682_v42  ;;  %1705 = vtanh.f32 %v774_v14 }
 0x183   :  { %v1686_v21 = vpop.eup %1685  ;;  %v813_v46 = vadd.f32 %v812_v54, %v794_v43  ;;  %v1011_v29 = vadd.f32 %v1010_v53, %v2328_v23  ;;  %v1099_v44 = vpop.f32.mrf.mxu1  ;;  %484 = vadd.xlane.f32.xlu0 %v483_v39  ;;  %v796_v48 = vmul.f32 %v1684_v31, %v2350_v6 }
 0x184   :  { %v1688_v32 = vpop.eup %1687  ;;  %v1100_v59 = vadd.f32 %v1099_v44, %v2328_v23  ;;  %v1012_v47 = vpop.f32.mrf.mxu0  ;;  %v798_v55 = vmul.f32 0.0, %v1686_v21 }
 0x185   :  { %v1690_v58 = vpop.eup %1689  ;;  %v797_v45 = vmul.f32 0.0, %v1688_v32  ;;  %v814_v38 = vadd.f32 %v813_v46, %v795_v26  ;;  %1707 = vtanh.f32 %v1011_v29  ;;  %v1013_v50 = vadd.f32 %v1012_v47, %v2328_v23  ;;  %v1101_v51 = vpop.f32.mrf.mxu1 }
 0x186   :  { %v1692_v49 = vpop.eup %1691  ;;  %1709 = vtanh.f32 %v1100_v59  ;;  %v1102_v62 = vadd.f32 %v1101_v51, %v2328_v23  ;;  %v1016_v61 = vpop.f32.mrf.mxu0  ;;  %v799_v4 = vmul.f32 0.0, %v1690_v58 }
 0x187   :  { %v1694_v52 = vpop.eup %1693  ;;  %815 = vadd.xlane.f32.xlu1 %v814_v38  ;;  %v817_v33 = vadd.f32 %v797_v45, %v796_v48  ;;  %1711 = vtanh.f32 %v1013_v50  ;;  %v1017_v15 = vadd.f32 %v1016_v61, %v2331_v24  ;;  %v1105_v63 = vpop.f32.mrf.mxu1  ;;  %v800_v1 = vmul.f32 %v1692_v49, %v2350_v6 }
 0x188   :  { %v801_v56 = vmul.f32 0.0, %v1694_v52  ;;  %1713 = vtanh.f32 %v1102_v62  ;;  %v1106_v2 = vadd.f32 %v1105_v63, %v2331_v24  ;;  %v1018_v3 = vpop.f32.mrf.mxu0 }
 0x189   :  { %v818_v5 = vadd.f32 %v817_v33, %v798_v55  ;;  %v1696_v34 = vpop.eup %1695  ;;  %1715 = vtanh.f32 %v1017_v15  ;;  %v1019_v8 = vadd.f32 %v1018_v3, %v2331_v24  ;;  %v1107_v35 = vpop.f32.mrf.mxu1 }
 0x18a   :  { %v822_v57 = vadd.f32 %v801_v56, %v800_v1  ;;  %v802_v9 = vmul.f32 0.0, %v1696_v34  ;;  %1717 = vtanh.f32 %v1106_v2  ;;  %v1108_v10 = vadd.f32 %v1107_v35, %v2331_v24 }
 0x18b   :  { %v819_v25 = vadd.f32 %v818_v5, %v799_v4  ;;  %v1698_v11 = vpop.eup %1697  ;;  %1719 = vtanh.f32 %v1019_v8  ;;  %v1022_v36 = vpop.f32.mrf.mxu0 }
 0x18c   :  { %v1700_v22 = vpop.eup %1699  ;;  %v1023_v7 = vadd.f32 %v1022_v36, %v2339_v60  ;;  %v1111_v40 = vpop.f32.mrf.mxu1  ;;  %v803_v41 = vmul.f32 0.0, %v1698_v11  ;;  %v823_v37 = vadd.f32 %v822_v57, %v802_v9  ;;  %1721 = vtanh.f32 %v1108_v10 }
 0x18d   :  { %820 = vadd.xlane.f32.xlu0 %v819_v25  ;;  %v1702_v12 = vpop.eup %1701  ;;  %v1112_v13 = vadd.f32 %v1111_v40, %v2339_v60  ;;  %v1024_v27 = vpop.f32.mrf.mxu0  ;;  %v804_v30 = vmul.f32 %v1700_v22, %v2350_v6 }
 0x18e   :  { %v1704_v16 = vpop.eup %1703  ;;  %1723 = vtanh.f32 %v1023_v7  ;;  %v1025_v28 = vadd.f32 %v1024_v27, %v2339_v60  ;;  %v1113_v17 = vpop.f32.mrf.mxu1  ;;  %v824_v18 = vadd.f32 %v823_v37, %v803_v41  ;;  %v806_v14 = vmul.f32 0.0, %v1702_v12 }
 0x18f   :  { %v805_v19 = vmul.f32 0.0, %v1704_v16  ;;  %1725 = vtanh.f32 %v1112_v13  ;;  %v1114_v20 = vadd.f32 %v1113_v17, %v2339_v60  ;;  %v1706_v42 = vpop.eup %1705 }
 0x190   :  { %1727 = vtanh.f32 %v1025_v28  ;;  %v1028_v43 = vpop.f32.mrf.mxu0  ;;  %825 = vadd.xlane.f32.xlu1 %v824_v18  ;;  %v807_v44 = vmul.f32 0.0, %v1706_v42 }
 0x191   :  { %v1029_v54 = vadd.f32 %v1028_v43, %v2346_v0  ;;  %v1117_v31 = vpop.f32.mrf.mxu1  ;;  %v827_v39 = vadd.f32 %v805_v19, %v804_v30  ;;  %1729 = vtanh.f32 %v1114_v20 }
 0x192   :  { %v1708_v21 = vpop.eup %1707  ;;  %v1118_v53 = vadd.f32 %v1117_v31, %v2346_v0  ;;  %v1030_v26 = vpop.f32.mrf.mxu0 }
 0x193   :  { %v1710_v46 = vpop.eup %1709  ;;  %1731 = vtanh.f32 %v1029_v54  ;;  %v1031_v32 = vadd.f32 %v1030_v26, %v2346_v0  ;;  %v1119_v29 = vpop.f32.mrf.mxu1  ;;  %v828_v58 = vadd.f32 %v827_v39, %v806_v14  ;;  %v1138_v50 = vmul.f32 %v1708_v21, %v2350_v6 }
 0x194   :  { %v1712_v45 = vpop.eup %1711  ;;  %1733 = vtanh.f32 %v1118_v53  ;;  %v1120_v59 = vadd.f32 %v1119_v29, %v2346_v0  ;;  %v1140_v61 = vmul.f32 0.0, %v1710_v46 }
 0x195   :  { %v1714_v47 = vpop.eup %1713  ;;  %v1139_v38 = vmul.f32 0.0, %v1712_v45  ;;  %1735 = vtanh.f32 %v1031_v32  ;;  %v1356_v48 = vpop.f32.mrf.mxu0  ;;  %v829_v49 = vadd.f32 %v828_v58, %v807_v44 }
 0x196   :  { %v1716_v51 = vpop.eup %1715  ;;  %v1357_v52 = vadd.f32 %v1356_v48, %v2328_v23  ;;  %v1445_v55 = vpop.f32.mrf.mxu1  ;;  %1737 = vtanh.f32 %v1120_v59  ;;  %v1141_v3 = vmul.f32 0.0, %v1714_v47 }
 0x197   :  { %v1718_v62 = vpop.eup %1717  ;;  %v1446_v33 = vadd.f32 %v1445_v55, %v2328_v23  ;;  %v1358_v56 = vpop.f32.mrf.mxu0  ;;  %830 = vadd.xlane.f32.xlu0 %v829_v49  ;;  %v1158_v15 = vadd.f32 %v1139_v38, %v1138_v50  ;;  %v1142_v4 = vmul.f32 %v1716_v51, %v2350_v6 }
 0x198   :  { %v1720_v63 = vpop.eup %1719  ;;  %1739 = vtanh.f32 %v1357_v52  ;;  %v1359_v1 = vadd.f32 %v1358_v56, %v2328_v23  ;;  %v1447_v2 = vpop.f32.mrf.mxu1  ;;  %v1144_v9 = vmul.f32 0.0, %v1718_v62 }
 0x199   :  { %v1143_v5 = vmul.f32 0.0, %v1720_v63  ;;  %1741 = vtanh.f32 %v1446_v33  ;;  %v1448_v34 = vadd.f32 %v1447_v2, %v2328_v23  ;;  %v1362_v8 = vpop.f32.mrf.mxu0  ;;  %v1159_v35 = vadd.f32 %v1158_v15, %v1140_v61  ;;  %v1722_v57 = vpop.eup %1721 }
 0x19a   :  { %1743 = vtanh.f32 %v1359_v1  ;;  %v1363_v10 = vadd.f32 %v1362_v8, %v2331_v24  ;;  %v1451_v25 = vpop.f32.mrf.mxu1  ;;  %v1145_v16 = vmul.f32 0.0, %v1722_v57 }
 0x19b   :  { %v1724_v11 = vpop.eup %1723  ;;  %1745 = vtanh.f32 %v1448_v34  ;;  %v1452_v36 = vadd.f32 %v1451_v25, %v2331_v24  ;;  %v1364_v22 = vpop.f32.mrf.mxu0  ;;  %v1160_v7 = vadd.f32 %v1159_v35, %v1141_v3  ;;  %v1163_v40 = vadd.f32 %v1143_v5, %v1142_v4 }
 0x19c   :  { %v1726_v41 = vpop.eup %1725  ;;  %1747 = vtanh.f32 %v1363_v10  ;;  %v1365_v37 = vadd.f32 %v1364_v22, %v2331_v24  ;;  %v1453_v23 = vpop.f32.mrf.mxu1  ;;  %v1146_v20 = vmul.f32 %v1724_v11, %v2350_v6 }
 0x19d   :  { %v1728_v12 = vpop.eup %1727  ;;  %1749 = vtanh.f32 %v1452_v36  ;;  %v1454_v13 = vadd.f32 %v1453_v23, %v2331_v24  ;;  %v1368_v27 = vpop.f32.mrf.mxu0  ;;  %1161 = vadd.xlane.f32.xlu1 %v1160_v7  ;;  %v1164_v28 = vadd.f32 %v1163_v40, %v1144_v9  ;;  %v1148_v31 = vmul.f32 0.0, %v1726_v41 }
 0x19e   :  { %v1147_v17 = vmul.f32 0.0, %v1728_v12  ;;  %1751 = vtanh.f32 %v1365_v37  ;;  %v1369_v18 = vadd.f32 %v1368_v27, %v2339_v60  ;;  %v1457_v19 = vpop.f32.mrf.mxu1  ;;  %v1730_v30 = vpop.eup %1729 }
 0x19f   :  { %1753 = vtanh.f32 %v1454_v13  ;;  %v1458_v42 = vadd.f32 %v1457_v19, %v2339_v60  ;;  %v1370_v43 = vpop.f32.mrf.mxu0  ;;  %v1165_v14 = vadd.f32 %v1164_v28, %v1145_v16  ;;  %v1149_v58 = vmul.f32 0.0, %v1730_v30 }
 0x1a0   :  { %v1732_v54 = vpop.eup %1731  ;;  %1755 = vtanh.f32 %v1369_v18  ;;  %v1371_v24 = vadd.f32 %v1370_v43, %v2339_v60  ;;  %v1459_v39 = vpop.f32.mrf.mxu1  ;;  %v1168_v21 = vadd.f32 %v1147_v17, %v1146_v20 }
 0x1a1   :  { %v1734_v53 = vpop.eup %1733  ;;  %1757 = vtanh.f32 %v1458_v42  ;;  %v1460_v26 = vadd.f32 %v1459_v39, %v2339_v60  ;;  %v1374_v46 = vpop.f32.mrf.mxu0  ;;  %1166 = vadd.xlane.f32.xlu0 %v1165_v14  ;;  %v1150_v48 = vmul.f32 %v1732_v54, %v2350_v6 }
 0x1a2   :  { %v1736_v32 = vpop.eup %1735  ;;  %1759 = vtanh.f32 %v1371_v24  ;;  %v1375_v29 = vadd.f32 %v1374_v46, %v2346_v0  ;;  %v1463_v44 = vpop.f32.mrf.mxu1  ;;  %v1169_v45 = vadd.f32 %v1168_v21, %v1148_v31  ;;  %v1152_v55 = vmul.f32 0.0, %v1734_v53 }
 0x1a3   :  { %v1151_v59 = vmul.f32 0.0, %v1736_v32  ;;  %1761 = vtanh.f32 %v1460_v26  ;;  %v1464_v47 = vadd.f32 %v1463_v44, %v2346_v0  ;;  %v1376_v38 = vpop.f32.mrf.mxu0  ;;  %v1738_v49 = vpop.eup %1737  ;;  %v1546_v32 = vld [vmem:[%s2456_s6 + $0x10] sm:$0xff]  ;;  %v462_v44 = vld [vmem:[#allocation2] sm:$0xff] }
 0x1a4   :  { %1763 = vtanh.f32 %v1375_v29  ;;  %v1377_v60 = vadd.f32 %v1376_v38, %v2346_v0  ;;  %v1465_v50 = vpop.f32.mrf.mxu1  ;;  %v1170_v51 = vadd.f32 %v1169_v45, %v1149_v58  ;;  %v1153_v15 = vmul.f32 0.0, %v1738_v49  ;;  %v1547_v29 = vld [vmem:[%s2456_s6 + $0x18] sm:$0xff]  ;;  %v2429_v58 = vpop.permute.xlu1 %1550  ;;  %v464_v49 = vld [vmem:[#allocation2 + $0x10] sm:$0xff] }
 0x1a5   :  { %v1740_v52 = vpop.eup %1739  ;;  %1765 = vtanh.f32 %v1464_v47  ;;  %v1466_v62 = vadd.f32 %v1465_v50, %v2346_v0  ;;  %v1173_v61 = vadd.f32 %v1151_v59, %v1150_v48  ;;  %v463_v47 = vld [vmem:[#allocation2 + $0x8] sm:$0xff] }
 0x1a6   :  { %v1742_v33 = vpop.eup %1741  ;;  %1767 = vtanh.f32 %v1377_v60  ;;  %1171 = vadd.xlane.f32.xlu1 %v1170_v51  ;;  %v1484_v3 = vmul.f32 %v1740_v52, %v2350_v6  ;;  %v465_v51 = vld [vmem:[#allocation2 + $0x18] sm:$0xff] }
 0x1a7   :  { %v1744_v56 = vpop.eup %1743  ;;  %v1174_v63 = vadd.f32 %v1173_v61, %v1152_v55  ;;  %1769 = vtanh.f32 %v1466_v62  ;;  %v1486_v8 = vmul.f32 0.0, %v1742_v33 }
 0x1a8   :  { %v1746_v1 = vpop.eup %1745  ;;  %v1485_v2 = vmul.f32 0.0, %v1744_v56 }
 0x1a9   :  { %v1748_v4 = vpop.eup %1747  ;;  %v1175_v5 = vadd.f32 %v1174_v63, %v1153_v15  ;;  %v1487_v10 = vmul.f32 0.0, %v1746_v1 }
 0x1aa   :  { %v1750_v34 = vpop.eup %1749  ;;  %v1504_v35 = vadd.f32 %v1485_v2, %v1484_v3  ;;  %v1488_v11 = vmul.f32 %v1748_v4, %v2350_v6 }
 0x1ab   :  { %v1752_v57 = vpop.eup %1751  ;;  %1176 = vadd.xlane.f32.xlu0 %v1175_v5  ;;  %v1490_v7 = vmul.f32 0.0, %v1750_v34 }
 0x1ac   :  { %v1754_v0 = vpop.eup %1753  ;;  %v1489_v9 = vmul.f32 0.0, %v1752_v57  ;;  %v1505_v25 = vadd.f32 %v1504_v35, %v1486_v8 }
 0x1ad   :  { %v1756_v36 = vpop.eup %1755  ;;  %v1491_v13 = vmul.f32 0.0, %v1754_v0 }
 0x1ae   :  { %v1758_v22 = vpop.eup %1757  ;;  %v1506_v40 = vadd.f32 %v1505_v25, %v1487_v10  ;;  %v1509_v41 = vadd.f32 %v1489_v9, %v1488_v11  ;;  %v1492_v16 = vmul.f32 %v1756_v36, %v2350_v6 }
 0x1af   :  { %v1760_v37 = vpop.eup %1759  ;;  %v1494_v18 = vmul.f32 0.0, %v1758_v22 }
 0x1b0   :  { %v1762_v23 = vpop.eup %1761  ;;  %v1493_v12 = vmul.f32 0.0, %v1760_v37  ;;  %1507 = vadd.xlane.f32.xlu1 %v1506_v40  ;;  %v1510_v27 = vadd.f32 %v1509_v41, %v1490_v7 }
 0x1b1   :  { %v1764_v28 = vpop.eup %1763  ;;  %v1495_v43 = vmul.f32 0.0, %v1762_v23 }
 0x1b2   :  { %v1766_v17 = vpop.eup %1765  ;;  %v1511_v19 = vadd.f32 %v1510_v27, %v1491_v13  ;;  %v1514_v20 = vadd.f32 %v1493_v12, %v1492_v16  ;;  %v1496_v54 = vmul.f32 %v1764_v28, %v2350_v6  ;;  %v1545_v6 = vld [vmem:[%s2456_s6 + $0x8] sm:$0xff] }
 0x1b3   :  { %v1768_v30 = vpop.eup %1767  ;;  %v1498_v24 = vmul.f32 0.0, %v1766_v17 }
 0x1b4   :  { %v1497_v42 = vmul.f32 0.0, %v1768_v30  ;;  %1512 = vadd.xlane.f32.xlu0 %v1511_v19  ;;  %v1515_v14 = vadd.f32 %v1514_v20, %v1494_v18  ;;  %v1770_v31 = vpop.eup %1769 }
 0x1b5   :  { %v1499_v53 = vmul.f32 0.0, %v1770_v31 }
 0x1b6   :  { %v1516_v39 = vadd.f32 %v1515_v14, %v1495_v43  ;;  %v1519_v21 = vadd.f32 %v1497_v42, %v1496_v54 }
 0x1b8   :  { %1517 = vadd.xlane.f32.xlu1 %v1516_v39  ;;  %v1520_v26 = vadd.f32 %v1519_v21, %v1498_v24 }
 0x1ba   :  { %v1521_v46 = vadd.f32 %v1520_v26, %v1499_v53 }
 0x1bc   :  { %1522 = vadd.xlane.f32.xlu0 %v1521_v46 }
 0x1c9   :  { %1560 = vperm.xlu1 %1642, %v1546_v32  }
 0x1cd   :  { %1565 = vperm.xlu1 %1642, %v1547_v29  }
 0x1d2   :  { %1555 = vperm.xlu0 %1641, %v1545_v6  }
 0x1fd   :  { %v470_v45 = vpop.xlane.xlu0 %469 }
 0x1fe   :  { %v486_v59 = vadd.f32 %v470_v45, %v462_v44 }
 0x200   :  { %491 = vst.msk [vmem:[#allocation2] sm:$0xff] %vm490_vm5, %v486_v59  ;;  %v475_v38 = vpop.xlane.xlu1 %474 }
 0x201   :  { %v487_v48 = vadd.f32 %v475_v38, %v463_v47 }
 0x203   :  { %492 = vst.msk [vmem:[#allocation2 + $0x8] sm:$0xff] %vm490_vm5, %v487_v48 }
 0x205   :  { %v480_v60 = vpop.xlane.xlu0 %479 }
 0x206   :  { %v488_v50 = vadd.f32 %v480_v60, %v464_v49 }
 0x207   :  { %v808_v61 = vld [vmem:[#allocation2] sm:$0xff] }
 0x208   :  { %493 = vst.msk [vmem:[#allocation2 + $0x10] sm:$0xff] %vm490_vm5, %v488_v50 }
 0x20a   :  { %v809_v56 = vld [vmem:[#allocation2 + $0x8] sm:$0xff] }
 0x20c   :  { %v485_v52 = vpop.xlane.xlu0 %484 }
 0x20d   :  { %v489_v55 = vadd.f32 %v485_v52, %v465_v51 }
 0x20f   :  { %494 = vst.msk [vmem:[#allocation2 + $0x18] sm:$0xff] %vm490_vm5, %v489_v55  ;;  %v810_v2 = vld [vmem:[#allocation2 + $0x10] sm:$0xff] }
 0x210   :  { %v816_v62 = vpop.xlane.xlu1 %815 }
 0x211   :  { %v832_v33 = vadd.f32 %v816_v62, %v808_v61 }
 0x213   :  { %837 = vst.msk [vmem:[#allocation2] sm:$0xff] %vm836_vm6, %v832_v33 }
 0x216   :  { %v821_v15 = vpop.xlane.xlu0 %820  ;;  %v811_v4 = vld [vmem:[#allocation2 + $0x18] sm:$0xff] }
 0x217   :  { %v833_v63 = vadd.f32 %v821_v15, %v809_v56 }
 0x219   :  { %838 = vst.msk [vmem:[#allocation2 + $0x8] sm:$0xff] %vm836_vm6, %v833_v63  ;;  %v826_v1 = vpop.xlane.xlu1 %825 }
 0x21a   :  { %v834_v3 = vadd.f32 %v826_v1, %v810_v2  ;;  %v1154_v35 = vld [vmem:[#allocation2] sm:$0xff] }
 0x21c   :  { %839 = vst.msk [vmem:[#allocation2 + $0x10] sm:$0xff] %vm836_vm6, %v834_v3 }
 0x220   :  { %v831_v5 = vpop.xlane.xlu0 %830  ;;  %v1155_v0 = vld [vmem:[#allocation2 + $0x8] sm:$0xff] }
 0x221   :  { %v835_v34 = vadd.f32 %v831_v5, %v811_v4 }
 0x223   :  { %840 = vst.msk [vmem:[#allocation2 + $0x18] sm:$0xff] %vm836_vm6, %v835_v34  ;;  %v1156_v11 = vld [vmem:[#allocation2 + $0x10] sm:$0xff] }
 0x226   :  { %v1162_v8 = vpop.xlane.xlu1 %1161 }
 0x227   :  { %v1178_v57 = vadd.f32 %v1162_v8, %v1154_v35 }
 0x229   :  { %1183 = vst.msk [vmem:[#allocation2] sm:$0xff] %vm1182_vm7, %v1178_v57 }
 0x22a   :  { %v1167_v9 = vpop.xlane.xlu0 %1166  ;;  %v1157_v22 = vld [vmem:[#allocation2 + $0x18] sm:$0xff] }
 0x22b   :  { %v1179_v10 = vadd.f32 %v1167_v9, %v1155_v0 }
 0x22d   :  { %1184 = vst.msk [vmem:[#allocation2 + $0x8] sm:$0xff] %vm1182_vm7, %v1179_v10 }
 0x22f   :  { %v1172_v25 = vpop.xlane.xlu1 %1171 }
 0x230   :  { %v1180_v36 = vadd.f32 %v1172_v25, %v1156_v11  ;;  %v1500_v37 = vld [vmem:[#allocation2] sm:$0xff] }
 0x232   :  { %1185 = vst.msk [vmem:[#allocation2 + $0x10] sm:$0xff] %vm1182_vm7, %v1180_v36 }
 0x234   :  { %v1177_v7 = vpop.xlane.xlu0 %1176  ;;  %v1501_v12 = vld [vmem:[#allocation2 + $0x8] sm:$0xff] }
 0x235   :  { %v1181_v40 = vadd.f32 %v1177_v7, %v1157_v22 }
 0x237   :  { %1186 = vst.msk [vmem:[#allocation2 + $0x18] sm:$0xff] %vm1182_vm7, %v1181_v40 }
 0x239   :  { %v1508_v41 = vpop.xlane.xlu1 %1507  ;;  %v1502_v28 = vld [vmem:[#allocation2 + $0x10] sm:$0xff] }
 0x23a   :  { %v1524_v23 = vadd.f32 %v1508_v41, %v1500_v37 }
 0x23c   :  { %1529 = vst.msk [vmem:[#allocation2] sm:$0xff] %vm1528_vm8, %v1524_v23 }
 0x23d   :  { %v1513_v13 = vpop.xlane.xlu0 %1512 }
 0x23e   :  { %v1525_v27 = vadd.f32 %v1513_v13, %v1501_v12  ;;  %v1503_v18 = vld [vmem:[#allocation2 + $0x18] sm:$0xff] }
 0x240   :  { %1530 = vst.msk [vmem:[#allocation2 + $0x8] sm:$0xff] %vm1528_vm8, %v1525_v27 }
 0x241   :  { %v1518_v16 = vpop.xlane.xlu1 %1517 }
 0x242   :  { %v1526_v17 = vadd.f32 %v1518_v16, %v1502_v28 }
 0x243   :  { %v1536_v20 = vld [vmem:[#allocation2] sm:$0xff] }
 0x244   :  { %1531 = vst.msk [vmem:[#allocation2 + $0x10] sm:$0xff] %vm1528_vm8, %v1526_v17  ;;  %v1540_v42 = vmul.f32 0.125, %v1536_v20 }
 0x245   :  { %v1523_v19 = vpop.xlane.xlu0 %1522  ;;  %v1561_v14 = vpop.permute.xlu1 %1560 }
 0x246   :  { %v1527_v30 = vadd.f32 %v1523_v19, %v1503_v18  ;;  %v1568_v39 = vmul.f32 %v2429_v58, %v1540_v42 }
 0x247   :  { %v1537_v43 = vld [vmem:[#allocation2 + $0x8] sm:$0xff] }
 0x248   :  { %1532 = vst.msk [vmem:[#allocation2 + $0x18] sm:$0xff] %vm1528_vm8, %v1527_v30  ;;  %v1541_v24 = vmul.f32 0.125, %v1537_v43  ;;  %v1573_v29 = vsel %vm31_vm4, %v1568_v39, 0.0 }
 0x249   :  { %v1566_v44 = vpop.permute.xlu1 %1565 }
 0x24b   :  { %v1538_v54 = vld [vmem:[#allocation2 + $0x10] sm:$0xff] }
 0x24c   :  { %v1542_v31 = vmul.f32 0.125, %v1538_v54 }
 0x24d   :  { %v1556_v21 = vpop.permute.xlu0 %1555 }
 0x24e   :  { %v1570_v53 = vmul.f32 %v1561_v14, %v1542_v31  ;;  %v1569_v26 = vmul.f32 %v1556_v21, %v1541_v24 }
 0x24f   :  { %v1539_v46 = vld [vmem:[#allocation2 + $0x18] sm:$0xff] }
 0x250   :  { %v1543_v32 = vmul.f32 0.125, %v1539_v46  ;;  %v1574_v6 = vsel %vm31_vm4, %v1569_v26, 0.0  ;;  %v1576_v59 = vsel %vm31_vm4, %v1570_v53, 0.0 }
 0x251   :  { %v1575_v45 = vadd.f32 %v1574_v6, %v1573_v29 }
 0x252   :  { %v1571_v47 = vmul.f32 %v1566_v44, %v1543_v32 }
 0x253   :  { %v1577_v38 = vadd.f32 %v1576_v59, %v1575_v45 }
 0x254   :  { %v1578_v48 = vsel %vm31_vm4, %v1571_v47, 0.0 }
 0x255   :  { %v1579_v49 = vadd.f32 %v1578_v48, %v1577_v38 }
 0x257   :  { %v1580_v60 = vrot.slane %v1579_v49, 4 }
 0x259   :  { %v1581_v58 = vadd.f32 %v1580_v60, %v1579_v49 }
 0x25b   :  { %v1582_v50 = vrot.slane %v1581_v58, 2 }
 0x25d   :  { %v1583_v51 = vadd.f32 %v1582_v50, %v1581_v58 }
 0x25f   :  { %v1584_v52 = vrot.slane %v1583_v51, 1 }
 0x261   :  { %v1585_v55 = vadd.f32 %v1584_v52, %v1583_v51 }
 0x263   :  { %v1586_v62 = vsel %vm31_vm4, %v1585_v55, -inf }
 0x264   :  { %1587 = vmax.xlane.f32.xlu0 %v1586_v62 }
 0x2ed   :  { %v1588_v61 = vpop.xlane.xlu0 %1587 }
 0x2ee   :  { %v1589_v33 = vsub.f32 %v1585_v55, %v1588_v61 }
 0x2f0   :  { %v1590_v56 = vmul.f32 1.442695, %v1589_v33 }
 0x2f2   :  { %1771 = vpow2.f32 %v1590_v56 }
 0x2ff   :  { %v1772_v15 = vpop.eup %1771 }
 0x300   :  { %v1592_v63 = vsel %vm31_vm4, %v1772_v15, 0.0 }
 0x301   :  { %1593 = vadd.xlane.f32.xlu1 %v1592_v63 }
 0x38a   :  { %v1594_v1 = vpop.xlane.xlu1 %1593 }
 0x38b   :  { %1773 = vrcp.f32 %v1594_v1 }
 0x398   :  { %v1774_v2 = vpop.eup %1773 }
 0x399   :  { %v1596_v3 = vmul.f32 %v1774_v2, %v1772_v15 }
 0x39b   :  { %1598 = vst.msk [vmem:[%s2460_s7] sm:$0x1] %vm1597_vm9, %v1596_v3 }

</bundles_post_ra>
